<compile_context>
chip_gen: v7x
topology: tpu7x:2x2x1
jax: 0.10.0
libtpu: 0.0.40
codegen_flags: <defaults>
</compile_context>

<pallas_src>
import numpy as np
import jax
import jax.numpy as jnp
from jax import lax
from jax.experimental import pallas as pl
from jax.experimental.pallas import tpu as pltpu


# ---------------------------------------------------------------------------
# Fused kernel (built per static per-sample length L)
# ---------------------------------------------------------------------------
def _make_disc_kernel(L):
    f32 = jnp.float32

    def lrelu(v):
        return jnp.where(v >= 0, v, 0.2 * v)

    def conv3_same(h, w_ref, l):
        # h: (m, Cin) with m = bb*l, samples contiguous along rows (sublanes).
        # w_ref: (3, Cin, Cout).  "same" zero padding: +-1 taps are sublane rolls masked
        # to zero at sample boundaries (rows t with t % l == 0 / t % l == l-1).
        m, cin = h.shape
        pos = lax.broadcasted_iota(jnp.int32, (m, cin), 0)
        prev = jnp.where(pos % l != 0, pltpu.roll(h, 1, axis=0), 0.0)          # h[t-1]
        nxt = jnp.where(pos % l != l - 1, pltpu.roll(h, m - 1, axis=0), 0.0)   # h[t+1]
        acc = jnp.dot(prev, w_ref[0], preferred_element_type=f32)
        acc = acc + jnp.dot(h, w_ref[1], preferred_element_type=f32)
        acc = acc + jnp.dot(nxt, w_ref[2], preferred_element_type=f32)
        return acc

    def avgpool2(h, scr_ref):
        # AvgPool1d(2): two strided sublane reads from VMEM scratch (no dense P matmul).
        m = h.shape[0]
        scr_ref[...] = h
        even = scr_ref[pl.ds(0, m // 2, stride=2), :]
        odd = scr_ref[pl.ds(1, m // 2, stride=2), :]
        return 0.5 * (even + odd)

    def kernel(x_ref, *rest):
        w_refs = rest[0:8]        # 8x (3, Cin, Cout) conv weights
        w5_ref = rest[8]          # (2, 1, C4): conv5 taps as rows
        o_ref = rest[9]           # (1, 1, bb*lf): lane-dense logits
        scr = rest[10:14]         # 4 pooling scratches

        h = x_ref[...].astype(f32)                        # (bb*L, 2)
        for blk in range(4):
            l = L >> blk
            h = lrelu(conv3_same(h, w_refs[2 * blk], l))
            h = lrelu(conv3_same(h, w_refs[2 * blk + 1], l))
            h = avgpool2(h, scr[blk])

        # conv5: kernel-2 "valid" conv, Cout = 1, emitted lane-dense (1, bb*lf).
        # Row t uses h[t] and h[t+1]; positions with t % lf == lf-1 wrap into the next
        # sample and are sliced off in the wrapper (cheaper than an in-kernel gather).
        m4 = h.shape[0]
        h_next = pltpu.roll(h, m4 - 1, axis=0)            # h[t+1] with wraparound
        y = jnp.einsum('oc,mc->om', w5_ref[0], h, preferred_element_type=f32)
        y = y + jnp.einsum('oc,mc->om', w5_ref[1], h_next, preferred_element_type=f32)
        o_ref[...] = y.reshape(o_ref.shape).astype(o_ref.dtype)

    return kernel


# ---------------------------------------------------------------------------
# Wrapper
# ---------------------------------------------------------------------------
def forward(x_ncl, ws_oik, *, batch_block=None):
    """DiscriminatorCONV.forward.

    x_ncl:  (B, 2, L) PyTorch NCL layout.
    ws_oik: the 9 Conv1d weights in PyTorch (Cout, Cin, K) layout (bias=False).
    batch_block: samples per grid step (None -> whole batch in one step).  Use B//2 on
      v7x to occupy both TensorCores; a few steps on v5e/v6e enables input prefetch.
    """
    B, cin, L = x_ncl.shape
    assert L % 16 == 0 and L // 16 >= 2, "need L divisible by 16 with L//16 >= 2"
    bb = B if batch_block is None else batch_block
    assert B % bb == 0
    lf = L // 16
    # bb*L is always a multiple of 16 (>= 8), so the x BlockSpec is legal for any bb;
    # keep bb*L a multiple of 64 if you want every pooling stage sublane-aligned.

    # NCL -> NLC -> fold batch into the matmul M axis: (B*L, Cin), channels on lanes.
    x2d = jnp.transpose(x_ncl, (0, 2, 1)).reshape(B * L, cin)
    # PyTorch (Cout, Cin, 3) -> (3, Cin, Cout): each tap is a (Cin, Cout) MXU operand.
    ws = [jnp.transpose(w, (2, 1, 0)) for w in ws_oik[:8]]
    # conv5 (1, C4, 2) -> (2, 1, C4): each tap is a (1, C4) row for lane-dense logits.
    w5 = jnp.transpose(ws_oik[8], (2, 0, 1))

    grid = (B // bb,)
    # Weights total ~37 KB f32 -> default double-buffering is fine; no pipeline_mode
    # override needed once the big constant matrices are gone.
    in_specs = (
        [pl.BlockSpec((bb * L, cin), lambda g: (g, 0))]
        + [pl.BlockSpec(tuple(w.shape), lambda g: (0, 0, 0)) for w in ws]
        + [pl.BlockSpec(tuple(w5.shape), lambda g: (0, 0, 0))]
    )
    # Last two block dims equal the full dims -> legal for any batch_block, and the store
    # is lane-dense (bb*lf on the 128-lane axis) instead of an (m, 1) masked column.
    out_specs = pl.BlockSpec((1, 1, bb * lf), lambda g: (g, 0, 0))

    # One pooling scratch per stage; total 4*bb*L*ndf*4 bytes (tiny).
    scratch_shapes = [
        pltpu.VMEM((bb * (L >> k), int(ws_oik[2 * k].shape[0])), jnp.float32)
        for k in range(4)
    ]

    out = pl.pallas_call(
        _make_disc_kernel(L),
        out_shape=jax.ShapeDtypeStruct((B // bb, 1, bb * lf), jnp.float32),
        grid=grid,
        in_specs=in_specs,
        out_specs=out_specs,
        scratch_shapes=scratch_shapes,
        compiler_params=pltpu.CompilerParams(dimension_semantics=("parallel",)),
    )(x2d, *ws, w5)
    # Per-sample "valid" conv5 output = positions 0..lf-2; drop the wrapped position.
    return out.reshape(B, lf)[:, :lf - 1]


# ---------------------------------------------------------------------------
# Pure-JAX reference (matches the PyTorch module, NCL layout)
# ---------------------------------------------------------------------------
def ref_forward(x_ncl, ws_oik):
    def conv(v, w, pad):
        return lax.conv_general_dilated(
            v, w, window_strides=(1,), padding=[(pad, pad)],
            dimension_numbers=("NCH", "OIH", "NCH"),
            precision=lax.Precision.HIGHEST)

    def lrelu(v):
        return jnp.where(v >= 0, v, 0.2 * v)

    def pool(v):
        B, C, L = v.shape
        return v.reshape(B, C, L // 2, 2).mean(-1)

    y = x_ncl
    for i in range(4):
        y = lrelu(conv(y, ws_oik[2 * i], 1))
        y = lrelu(conv(y, ws_oik[2 * i + 1], 1))
        y = pool(y)
    y = conv(y, ws_oik[8], 0)
    return y.reshape(y.shape[0], -1)


if __name__ == "__main__":
    ndf = 8
    B, L = 2, 32  # input (B, 2, L); L // 16 = 2 so conv5 sees per-sample length 2

    # PyTorch Conv1d weight shapes (Cout, Cin, K), bias=False everywhere
    shapes = [
        (ndf, 2, 3), (ndf, ndf, 3),
        (ndf * 2, ndf, 3), (ndf * 2, ndf * 2, 3),
        (ndf * 4, ndf * 2, 3), (ndf * 4, ndf * 4, 3),
        (ndf * 8, ndf * 4, 3), (ndf * 8, ndf * 8, 3),
        (1, ndf * 8, 2),
    ]

    key = jax.random.PRNGKey(0)
    keys = jax.random.split(key, len(shapes) + 1)
    ws_oik = [
        jax.random.normal(k, s, jnp.float32) * (1.0 / (s[1] * s[2])) ** 0.5
        for k, s in zip(keys[:-1], shapes)
    ]
    x_ncl = jax.random.normal(keys[-1], (B, 2, L), jnp.float32)

    ref = ref_forward(x_ncl, ws_oik)

    # Single-step grid (whole batch folded into one block).
    out = jax.block_until_ready(jax.jit(forward)(x_ncl, ws_oik))
    assert out.shape == (B, L // 16 - 1), out.shape
    np.testing.assert_allclose(np.asarray(out), np.asarray(ref), rtol=1e-2, atol=1e-3)

    # Multi-step "parallel" grid (one sample per step): the v7x-megacore / pipelined path.
    out2 = jax.block_until_ready(
        jax.jit(lambda x, w: forward(x, w, batch_block=1))(x_ncl, ws_oik))
    np.testing.assert_allclose(np.asarray(out2), np.asarray(ref), rtol=1e-2, atol=1e-3)

    print("KERNEL_OK")
</pallas_src>

<mosaic_0001>
module attributes {stable_mosaic.version = 11 : i64} {
  func.func @kernel(%arg0: i32, %arg1: memref<64x2xf32, #tpu.memory_space<vmem>>, %arg2: memref<3x2x8xf32, #tpu.memory_space<vmem>>, %arg3: memref<3x8x8xf32, #tpu.memory_space<vmem>>, %arg4: memref<3x8x16xf32, #tpu.memory_space<vmem>>, %arg5: memref<3x16x16xf32, #tpu.memory_space<vmem>>, %arg6: memref<3x16x32xf32, #tpu.memory_space<vmem>>, %arg7: memref<3x32x32xf32, #tpu.memory_space<vmem>>, %arg8: memref<3x32x64xf32, #tpu.memory_space<vmem>>, %arg9: memref<3x64x64xf32, #tpu.memory_space<vmem>>, %arg10: memref<2x1x64xf32, #tpu.memory_space<vmem>>, %arg11: memref<1x1x4xf32, #tpu.memory_space<vmem>>, %arg12: memref<64x8xf32, #tpu.memory_space<vmem>>, %arg13: memref<32x16xf32, #tpu.memory_space<vmem>>, %arg14: memref<16x32xf32, #tpu.memory_space<vmem>>, %arg15: memref<8x64xf32, #tpu.memory_space<vmem>>) attributes {dimension_semantics = [#tpu.dimension_semantics<parallel>], iteration_bounds = array<i64: 1>, scalar_prefetch = 0 : i64, scratch_operands = 4 : i64, tpu.core_type = #tpu.core_type<tc>, window_params = [{transform_indices = @transform_0, window_bounds = array<i64: 64, 2>}, {pipeline_mode = #tpu.pipeline_mode<synchronous>, transform_indices = @transform_1, window_bounds = array<i64: 3, 2, 8>}, {pipeline_mode = #tpu.pipeline_mode<synchronous>, transform_indices = @transform_2, window_bounds = array<i64: 3, 8, 8>}, {pipeline_mode = #tpu.pipeline_mode<synchronous>, transform_indices = @transform_3, window_bounds = array<i64: 3, 8, 16>}, {pipeline_mode = #tpu.pipeline_mode<synchronous>, transform_indices = @transform_4, window_bounds = array<i64: 3, 16, 16>}, {pipeline_mode = #tpu.pipeline_mode<synchronous>, transform_indices = @transform_5, window_bounds = array<i64: 3, 16, 32>}, {pipeline_mode = #tpu.pipeline_mode<synchronous>, transform_indices = @transform_6, window_bounds = array<i64: 3, 32, 32>}, {pipeline_mode = #tpu.pipeline_mode<synchronous>, transform_indices = @transform_7, window_bounds = array<i64: 3, 32, 64>}, {pipeline_mode = #tpu.pipeline_mode<synchronous>, transform_indices = @transform_8, window_bounds = array<i64: 3, 64, 64>}, {pipeline_mode = #tpu.pipeline_mode<synchronous>, transform_indices = @transform_9, window_bounds = array<i64: 2, 1, 64>}, {transform_indices = @transform_10, window_bounds = array<i64: 1, 1, 4>}]} {
    %c0 = arith.constant 0 : index
    %c0_0 = arith.constant 0 : index
    %0 = vector.load %arg1[%c0, %c0_0] : memref<64x2xf32, #tpu.memory_space<vmem>>, vector<64x2xf32>
    %1 = tpu.iota {dimensions = array<i32: 0>} : vector<64x2xi32>
    %c32_i32 = arith.constant 32 : i32
    %c0_i32 = arith.constant 0 : i32
    %2 = arith.cmpi eq, %c32_i32, %c0_i32 : i32
    %c1_i32 = arith.constant 1 : i32
    %3 = arith.select %2, %c1_i32, %c32_i32 : i32
    %4 = vector.broadcast %3 : i32 to vector<64x2xi32>
    %5 = arith.remsi %1, %4 : vector<64x2xi32>
    %c0_i32_1 = arith.constant 0 : i32
    %6 = vector.broadcast %c0_i32_1 : i32 to vector<64x2xi32>
    %7 = arith.cmpi ne, %5, %6 : vector<64x2xi32>
    %c0_i32_2 = arith.constant 0 : i32
    %8 = vector.broadcast %c0_i32_2 : i32 to vector<64x2xi32>
    %9 = arith.cmpi slt, %5, %8 : vector<64x2xi32>
    %c0_i32_3 = arith.constant 0 : i32
    %10 = arith.cmpi slt, %3, %c0_i32_3 : i32
    %11 = vector.broadcast %10 : i1 to vector<64x2xi1>
    %12 = vector.broadcast %11 : vector<64x2xi1> to vector<64x2xi1>
    %13 = arith.xori %9, %12 : vector<64x2xi1>
    %14 = arith.andi %13, %7 : vector<64x2xi1>
    %15 = vector.broadcast %3 : i32 to vector<64x2xi32>
    %16 = arith.addi %5, %15 : vector<64x2xi32>
    %17 = arith.select %14, %16, %5 : vector<64x2xi1>, vector<64x2xi32>
    %c0_i32_4 = arith.constant 0 : i32
    %18 = vector.broadcast %c0_i32_4 : i32 to vector<64x2xi32>
    %19 = arith.cmpi ne, %17, %18 : vector<64x2xi32>
    %c1_i32_5 = arith.constant 1 : i32
    %20 = tpu.dynamic_rotate %0 by %c1_i32_5 dim 0 : vector<64x2xf32>, i32 -> vector<64x2xf32>
    %cst = arith.constant 0.000000e+00 : f32
    %21 = vector.broadcast %cst : f32 to vector<64x2xf32>
    %22 = arith.select %19, %20, %21 : vector<64x2xi1>, vector<64x2xf32>
    %c32_i32_6 = arith.constant 32 : i32
    %c0_i32_7 = arith.constant 0 : i32
    %23 = arith.cmpi eq, %c32_i32_6, %c0_i32_7 : i32
    %c1_i32_8 = arith.constant 1 : i32
    %24 = arith.select %23, %c1_i32_8, %c32_i32_6 : i32
    %25 = vector.broadcast %24 : i32 to vector<64x2xi32>
    %26 = arith.remsi %1, %25 : vector<64x2xi32>
    %c0_i32_9 = arith.constant 0 : i32
    %27 = vector.broadcast %c0_i32_9 : i32 to vector<64x2xi32>
    %28 = arith.cmpi ne, %26, %27 : vector<64x2xi32>
    %c0_i32_10 = arith.constant 0 : i32
    %29 = vector.broadcast %c0_i32_10 : i32 to vector<64x2xi32>
    %30 = arith.cmpi slt, %26, %29 : vector<64x2xi32>
    %c0_i32_11 = arith.constant 0 : i32
    %31 = arith.cmpi slt, %24, %c0_i32_11 : i32
    %32 = vector.broadcast %31 : i1 to vector<64x2xi1>
    %33 = vector.broadcast %32 : vector<64x2xi1> to vector<64x2xi1>
    %34 = arith.xori %30, %33 : vector<64x2xi1>
    %35 = arith.andi %34, %28 : vector<64x2xi1>
    %36 = vector.broadcast %24 : i32 to vector<64x2xi32>
    %37 = arith.addi %26, %36 : vector<64x2xi32>
    %38 = arith.select %35, %37, %26 : vector<64x2xi1>, vector<64x2xi32>
    %c31_i32 = arith.constant 31 : i32
    %39 = vector.broadcast %c31_i32 : i32 to vector<64x2xi32>
    %40 = arith.cmpi ne, %38, %39 : vector<64x2xi32>
    %c63_i32 = arith.constant 63 : i32
    %41 = tpu.dynamic_rotate %0 by %c63_i32 dim 0 : vector<64x2xf32>, i32 -> vector<64x2xf32>
    %cst_12 = arith.constant 0.000000e+00 : f32
    %42 = vector.broadcast %cst_12 : f32 to vector<64x2xf32>
    %43 = arith.select %40, %41, %42 : vector<64x2xi1>, vector<64x2xf32>
    %c0_13 = arith.constant 0 : index
    %c0_14 = arith.constant 0 : index
    %c0_15 = arith.constant 0 : index
    %44 = vector.load %arg2[%c0_13, %c0_14, %c0_15] : memref<3x2x8xf32, #tpu.memory_space<vmem>>, vector<1x2x8xf32>
    %45 = vector.shape_cast %44 : vector<1x2x8xf32> to vector<2x8xf32>
    %cst_16 = arith.constant dense<0.000000e+00> : vector<64x8xf32>
    %46 = tpu.matmul %22, %45, %cst_16 {dimension_numbers = #tpu.dot_dimension_numbers<[1], [0], [0], [1], [0, 0, 1, 1], [], []>} : vector<64x2xf32>, vector<2x8xf32>, vector<64x8xf32> -> vector<64x8xf32>
    %c1 = arith.constant 1 : index
    %c0_17 = arith.constant 0 : index
    %c0_18 = arith.constant 0 : index
    %47 = vector.load %arg2[%c1, %c0_17, %c0_18] : memref<3x2x8xf32, #tpu.memory_space<vmem>>, vector<1x2x8xf32>
    %48 = vector.shape_cast %47 : vector<1x2x8xf32> to vector<2x8xf32>
    %cst_19 = arith.constant dense<0.000000e+00> : vector<64x8xf32>
    %49 = tpu.matmul %0, %48, %cst_19 {dimension_numbers = #tpu.dot_dimension_numbers<[1], [0], [0], [1], [0, 0, 1, 1], [], []>} : vector<64x2xf32>, vector<2x8xf32>, vector<64x8xf32> -> vector<64x8xf32>
    %50 = arith.addf %46, %49 : vector<64x8xf32>
    %c2 = arith.constant 2 : index
    %c0_20 = arith.constant 0 : index
    %c0_21 = arith.constant 0 : index
    %51 = vector.load %arg2[%c2, %c0_20, %c0_21] : memref<3x2x8xf32, #tpu.memory_space<vmem>>, vector<1x2x8xf32>
    %52 = vector.shape_cast %51 : vector<1x2x8xf32> to vector<2x8xf32>
    %cst_22 = arith.constant dense<0.000000e+00> : vector<64x8xf32>
    %53 = tpu.matmul %43, %52, %cst_22 {dimension_numbers = #tpu.dot_dimension_numbers<[1], [0], [0], [1], [0, 0, 1, 1], [], []>} : vector<64x2xf32>, vector<2x8xf32>, vector<64x8xf32> -> vector<64x8xf32>
    %54 = arith.addf %50, %53 : vector<64x8xf32>
    %cst_23 = arith.constant 0.000000e+00 : f32
    %55 = vector.broadcast %cst_23 : f32 to vector<64x8xf32>
    %56 = arith.cmpf oge, %54, %55 : vector<64x8xf32>
    %cst_24 = arith.constant 2.000000e-01 : f32
    %57 = vector.broadcast %cst_24 : f32 to vector<64x8xf32>
    %58 = arith.mulf %57, %54 : vector<64x8xf32>
    %59 = arith.select %56, %54, %58 : vector<64x8xi1>, vector<64x8xf32>
    %60 = tpu.iota {dimensions = array<i32: 0>} : vector<64x8xi32>
    %c32_i32_25 = arith.constant 32 : i32
    %c0_i32_26 = arith.constant 0 : i32
    %61 = arith.cmpi eq, %c32_i32_25, %c0_i32_26 : i32
    %c1_i32_27 = arith.constant 1 : i32
    %62 = arith.select %61, %c1_i32_27, %c32_i32_25 : i32
    %63 = vector.broadcast %62 : i32 to vector<64x8xi32>
    %64 = arith.remsi %60, %63 : vector<64x8xi32>
    %c0_i32_28 = arith.constant 0 : i32
    %65 = vector.broadcast %c0_i32_28 : i32 to vector<64x8xi32>
    %66 = arith.cmpi ne, %64, %65 : vector<64x8xi32>
    %c0_i32_29 = arith.constant 0 : i32
    %67 = vector.broadcast %c0_i32_29 : i32 to vector<64x8xi32>
    %68 = arith.cmpi slt, %64, %67 : vector<64x8xi32>
    %c0_i32_30 = arith.constant 0 : i32
    %69 = arith.cmpi slt, %62, %c0_i32_30 : i32
    %70 = vector.broadcast %69 : i1 to vector<64x8xi1>
    %71 = vector.broadcast %70 : vector<64x8xi1> to vector<64x8xi1>
    %72 = arith.xori %68, %71 : vector<64x8xi1>
    %73 = arith.andi %72, %66 : vector<64x8xi1>
    %74 = vector.broadcast %62 : i32 to vector<64x8xi32>
    %75 = arith.addi %64, %74 : vector<64x8xi32>
    %76 = arith.select %73, %75, %64 : vector<64x8xi1>, vector<64x8xi32>
    %c0_i32_31 = arith.constant 0 : i32
    %77 = vector.broadcast %c0_i32_31 : i32 to vector<64x8xi32>
    %78 = arith.cmpi ne, %76, %77 : vector<64x8xi32>
    %c1_i32_32 = arith.constant 1 : i32
    %79 = tpu.dynamic_rotate %59 by %c1_i32_32 dim 0 : vector<64x8xf32>, i32 -> vector<64x8xf32>
    %cst_33 = arith.constant 0.000000e+00 : f32
    %80 = vector.broadcast %cst_33 : f32 to vector<64x8xf32>
    %81 = arith.select %78, %79, %80 : vector<64x8xi1>, vector<64x8xf32>
    %c32_i32_34 = arith.constant 32 : i32
    %c0_i32_35 = arith.constant 0 : i32
    %82 = arith.cmpi eq, %c32_i32_34, %c0_i32_35 : i32
    %c1_i32_36 = arith.constant 1 : i32
    %83 = arith.select %82, %c1_i32_36, %c32_i32_34 : i32
    %84 = vector.broadcast %83 : i32 to vector<64x8xi32>
    %85 = arith.remsi %60, %84 : vector<64x8xi32>
    %c0_i32_37 = arith.constant 0 : i32
    %86 = vector.broadcast %c0_i32_37 : i32 to vector<64x8xi32>
    %87 = arith.cmpi ne, %85, %86 : vector<64x8xi32>
    %c0_i32_38 = arith.constant 0 : i32
    %88 = vector.broadcast %c0_i32_38 : i32 to vector<64x8xi32>
    %89 = arith.cmpi slt, %85, %88 : vector<64x8xi32>
    %c0_i32_39 = arith.constant 0 : i32
    %90 = arith.cmpi slt, %83, %c0_i32_39 : i32
    %91 = vector.broadcast %90 : i1 to vector<64x8xi1>
    %92 = vector.broadcast %91 : vector<64x8xi1> to vector<64x8xi1>
    %93 = arith.xori %89, %92 : vector<64x8xi1>
    %94 = arith.andi %93, %87 : vector<64x8xi1>
    %95 = vector.broadcast %83 : i32 to vector<64x8xi32>
    %96 = arith.addi %85, %95 : vector<64x8xi32>
    %97 = arith.select %94, %96, %85 : vector<64x8xi1>, vector<64x8xi32>
    %c31_i32_40 = arith.constant 31 : i32
    %98 = vector.broadcast %c31_i32_40 : i32 to vector<64x8xi32>
    %99 = arith.cmpi ne, %97, %98 : vector<64x8xi32>
    %c63_i32_41 = arith.constant 63 : i32
    %100 = tpu.dynamic_rotate %59 by %c63_i32_41 dim 0 : vector<64x8xf32>, i32 -> vector<64x8xf32>
    %cst_42 = arith.constant 0.000000e+00 : f32
    %101 = vector.broadcast %cst_42 : f32 to vector<64x8xf32>
    %102 = arith.select %99, %100, %101 : vector<64x8xi1>, vector<64x8xf32>
    %c0_43 = arith.constant 0 : index
    %c0_44 = arith.constant 0 : index
    %c0_45 = arith.constant 0 : index
    %103 = vector.load %arg3[%c0_43, %c0_44, %c0_45] : memref<3x8x8xf32, #tpu.memory_space<vmem>>, vector<1x8x8xf32>
    %104 = vector.shape_cast %103 : vector<1x8x8xf32> to vector<8x8xf32>
    %cst_46 = arith.constant dense<0.000000e+00> : vector<64x8xf32>
    %105 = tpu.matmul %81, %104, %cst_46 {dimension_numbers = #tpu.dot_dimension_numbers<[1], [0], [0], [1], [0, 0, 1, 1], [], []>} : vector<64x8xf32>, vector<8x8xf32>, vector<64x8xf32> -> vector<64x8xf32>
    %c1_47 = arith.constant 1 : index
    %c0_48 = arith.constant 0 : index
    %c0_49 = arith.constant 0 : index
    %106 = vector.load %arg3[%c1_47, %c0_48, %c0_49] : memref<3x8x8xf32, #tpu.memory_space<vmem>>, vector<1x8x8xf32>
    %107 = vector.shape_cast %106 : vector<1x8x8xf32> to vector<8x8xf32>
    %cst_50 = arith.constant dense<0.000000e+00> : vector<64x8xf32>
    %108 = tpu.matmul %59, %107, %cst_50 {dimension_numbers = #tpu.dot_dimension_numbers<[1], [0], [0], [1], [0, 0, 1, 1], [], []>} : vector<64x8xf32>, vector<8x8xf32>, vector<64x8xf32> -> vector<64x8xf32>
    %109 = arith.addf %105, %108 : vector<64x8xf32>
    %c2_51 = arith.constant 2 : index
    %c0_52 = arith.constant 0 : index
    %c0_53 = arith.constant 0 : index
    %110 = vector.load %arg3[%c2_51, %c0_52, %c0_53] : memref<3x8x8xf32, #tpu.memory_space<vmem>>, vector<1x8x8xf32>
    %111 = vector.shape_cast %110 : vector<1x8x8xf32> to vector<8x8xf32>
    %cst_54 = arith.constant dense<0.000000e+00> : vector<64x8xf32>
    %112 = tpu.matmul %102, %111, %cst_54 {dimension_numbers = #tpu.dot_dimension_numbers<[1], [0], [0], [1], [0, 0, 1, 1], [], []>} : vector<64x8xf32>, vector<8x8xf32>, vector<64x8xf32> -> vector<64x8xf32>
    %113 = arith.addf %109, %112 : vector<64x8xf32>
    %cst_55 = arith.constant 0.000000e+00 : f32
    %114 = vector.broadcast %cst_55 : f32 to vector<64x8xf32>
    %115 = arith.cmpf oge, %113, %114 : vector<64x8xf32>
    %cst_56 = arith.constant 2.000000e-01 : f32
    %116 = vector.broadcast %cst_56 : f32 to vector<64x8xf32>
    %117 = arith.mulf %116, %113 : vector<64x8xf32>
    %118 = arith.select %115, %113, %117 : vector<64x8xi1>, vector<64x8xf32>
    %c0_57 = arith.constant 0 : index
    %c0_58 = arith.constant 0 : index
    %119 = vector.load %arg12[%c0_57, %c0_58] : memref<64x8xf32, #tpu.memory_space<vmem>>, vector<64x8xf32>
    tpu.vector_store %arg12[%c0_57, %c0_58], %118 {strides = array<i32>} : memref<64x8xf32, #tpu.memory_space<vmem>>, vector<64x8xf32>,
    %c0_59 = arith.constant 0 : index
    %c0_60 = arith.constant 0 : index
    %120 = tpu.strided_load %arg12[%c0_59, %c0_60] {strides = array<i32: 2, 1>} : memref<64x8xf32, #tpu.memory_space<vmem>>, vector<32x8xf32>
    %c1_61 = arith.constant 1 : index
    %c0_62 = arith.constant 0 : index
    %121 = tpu.strided_load %arg12[%c1_61, %c0_62] {strides = array<i32: 2, 1>} : memref<64x8xf32, #tpu.memory_space<vmem>>, vector<32x8xf32>
    %122 = arith.addf %120, %121 : vector<32x8xf32>
    %cst_63 = arith.constant 5.000000e-01 : f32
    %123 = vector.broadcast %cst_63 : f32 to vector<32x8xf32>
    %124 = arith.mulf %123, %122 : vector<32x8xf32>
    %125 = tpu.iota {dimensions = array<i32: 0>} : vector<32x8xi32>
    %c16_i32 = arith.constant 16 : i32
    %c0_i32_64 = arith.constant 0 : i32
    %126 = arith.cmpi eq, %c16_i32, %c0_i32_64 : i32
    %c1_i32_65 = arith.constant 1 : i32
    %127 = arith.select %126, %c1_i32_65, %c16_i32 : i32
    %128 = vector.broadcast %127 : i32 to vector<32x8xi32>
    %129 = arith.remsi %125, %128 : vector<32x8xi32>
    %c0_i32_66 = arith.constant 0 : i32
    %130 = vector.broadcast %c0_i32_66 : i32 to vector<32x8xi32>
    %131 = arith.cmpi ne, %129, %130 : vector<32x8xi32>
    %c0_i32_67 = arith.constant 0 : i32
    %132 = vector.broadcast %c0_i32_67 : i32 to vector<32x8xi32>
    %133 = arith.cmpi slt, %129, %132 : vector<32x8xi32>
    %c0_i32_68 = arith.constant 0 : i32
    %134 = arith.cmpi slt, %127, %c0_i32_68 : i32
    %135 = vector.broadcast %134 : i1 to vector<32x8xi1>
    %136 = vector.broadcast %135 : vector<32x8xi1> to vector<32x8xi1>
    %137 = arith.xori %133, %136 : vector<32x8xi1>
    %138 = arith.andi %137, %131 : vector<32x8xi1>
    %139 = vector.broadcast %127 : i32 to vector<32x8xi32>
    %140 = arith.addi %129, %139 : vector<32x8xi32>
    %141 = arith.select %138, %140, %129 : vector<32x8xi1>, vector<32x8xi32>
    %c0_i32_69 = arith.constant 0 : i32
    %142 = vector.broadcast %c0_i32_69 : i32 to vector<32x8xi32>
    %143 = arith.cmpi ne, %141, %142 : vector<32x8xi32>
    %c1_i32_70 = arith.constant 1 : i32
    %144 = tpu.dynamic_rotate %124 by %c1_i32_70 dim 0 : vector<32x8xf32>, i32 -> vector<32x8xf32>
    %cst_71 = arith.constant 0.000000e+00 : f32
    %145 = vector.broadcast %cst_71 : f32 to vector<32x8xf32>
    %146 = arith.select %143, %144, %145 : vector<32x8xi1>, vector<32x8xf32>
    %c16_i32_72 = arith.constant 16 : i32
    %c0_i32_73 = arith.constant 0 : i32
    %147 = arith.cmpi eq, %c16_i32_72, %c0_i32_73 : i32
    %c1_i32_74 = arith.constant 1 : i32
    %148 = arith.select %147, %c1_i32_74, %c16_i32_72 : i32
    %149 = vector.broadcast %148 : i32 to vector<32x8xi32>
    %150 = arith.remsi %125, %149 : vector<32x8xi32>
    %c0_i32_75 = arith.constant 0 : i32
    %151 = vector.broadcast %c0_i32_75 : i32 to vector<32x8xi32>
    %152 = arith.cmpi ne, %150, %151 : vector<32x8xi32>
    %c0_i32_76 = arith.constant 0 : i32
    %153 = vector.broadcast %c0_i32_76 : i32 to vector<32x8xi32>
    %154 = arith.cmpi slt, %150, %153 : vector<32x8xi32>
    %c0_i32_77 = arith.constant 0 : i32
    %155 = arith.cmpi slt, %148, %c0_i32_77 : i32
    %156 = vector.broadcast %155 : i1 to vector<32x8xi1>
    %157 = vector.broadcast %156 : vector<32x8xi1> to vector<32x8xi1>
    %158 = arith.xori %154, %157 : vector<32x8xi1>
    %159 = arith.andi %158, %152 : vector<32x8xi1>
    %160 = vector.broadcast %148 : i32 to vector<32x8xi32>
    %161 = arith.addi %150, %160 : vector<32x8xi32>
    %162 = arith.select %159, %161, %150 : vector<32x8xi1>, vector<32x8xi32>
    %c15_i32 = arith.constant 15 : i32
    %163 = vector.broadcast %c15_i32 : i32 to vector<32x8xi32>
    %164 = arith.cmpi ne, %162, %163 : vector<32x8xi32>
    %c31_i32_78 = arith.constant 31 : i32
    %165 = tpu.dynamic_rotate %124 by %c31_i32_78 dim 0 : vector<32x8xf32>, i32 -> vector<32x8xf32>
    %cst_79 = arith.constant 0.000000e+00 : f32
    %166 = vector.broadcast %cst_79 : f32 to vector<32x8xf32>
    %167 = arith.select %164, %165, %166 : vector<32x8xi1>, vector<32x8xf32>
    %c0_80 = arith.constant 0 : index
    %c0_81 = arith.constant 0 : index
    %c0_82 = arith.constant 0 : index
    %168 = vector.load %arg4[%c0_80, %c0_81, %c0_82] : memref<3x8x16xf32, #tpu.memory_space<vmem>>, vector<1x8x16xf32>
    %169 = vector.shape_cast %168 : vector<1x8x16xf32> to vector<8x16xf32>
    %cst_83 = arith.constant dense<0.000000e+00> : vector<32x16xf32>
    %170 = tpu.matmul %146, %169, %cst_83 {dimension_numbers = #tpu.dot_dimension_numbers<[1], [0], [0], [1], [0, 0, 1, 1], [], []>} : vector<32x8xf32>, vector<8x16xf32>, vector<32x16xf32> -> vector<32x16xf32>
    %c1_84 = arith.constant 1 : index
    %c0_85 = arith.constant 0 : index
    %c0_86 = arith.constant 0 : index
    %171 = vector.load %arg4[%c1_84, %c0_85, %c0_86] : memref<3x8x16xf32, #tpu.memory_space<vmem>>, vector<1x8x16xf32>
    %172 = vector.shape_cast %171 : vector<1x8x16xf32> to vector<8x16xf32>
    %cst_87 = arith.constant dense<0.000000e+00> : vector<32x16xf32>
    %173 = tpu.matmul %124, %172, %cst_87 {dimension_numbers = #tpu.dot_dimension_numbers<[1], [0], [0], [1], [0, 0, 1, 1], [], []>} : vector<32x8xf32>, vector<8x16xf32>, vector<32x16xf32> -> vector<32x16xf32>
    %174 = arith.addf %170, %173 : vector<32x16xf32>
    %c2_88 = arith.constant 2 : index
    %c0_89 = arith.constant 0 : index
    %c0_90 = arith.constant 0 : index
    %175 = vector.load %arg4[%c2_88, %c0_89, %c0_90] : memref<3x8x16xf32, #tpu.memory_space<vmem>>, vector<1x8x16xf32>
    %176 = vector.shape_cast %175 : vector<1x8x16xf32> to vector<8x16xf32>
    %cst_91 = arith.constant dense<0.000000e+00> : vector<32x16xf32>
    %177 = tpu.matmul %167, %176, %cst_91 {dimension_numbers = #tpu.dot_dimension_numbers<[1], [0], [0], [1], [0, 0, 1, 1], [], []>} : vector<32x8xf32>, vector<8x16xf32>, vector<32x16xf32> -> vector<32x16xf32>
    %178 = arith.addf %174, %177 : vector<32x16xf32>
    %cst_92 = arith.constant 0.000000e+00 : f32
    %179 = vector.broadcast %cst_92 : f32 to vector<32x16xf32>
    %180 = arith.cmpf oge, %178, %179 : vector<32x16xf32>
    %cst_93 = arith.constant 2.000000e-01 : f32
    %181 = vector.broadcast %cst_93 : f32 to vector<32x16xf32>
    %182 = arith.mulf %181, %178 : vector<32x16xf32>
    %183 = arith.select %180, %178, %182 : vector<32x16xi1>, vector<32x16xf32>
    %184 = tpu.iota {dimensions = array<i32: 0>} : vector<32x16xi32>
    %c16_i32_94 = arith.constant 16 : i32
    %c0_i32_95 = arith.constant 0 : i32
    %185 = arith.cmpi eq, %c16_i32_94, %c0_i32_95 : i32
    %c1_i32_96 = arith.constant 1 : i32
    %186 = arith.select %185, %c1_i32_96, %c16_i32_94 : i32
    %187 = vector.broadcast %186 : i32 to vector<32x16xi32>
    %188 = arith.remsi %184, %187 : vector<32x16xi32>
    %c0_i32_97 = arith.constant 0 : i32
    %189 = vector.broadcast %c0_i32_97 : i32 to vector<32x16xi32>
    %190 = arith.cmpi ne, %188, %189 : vector<32x16xi32>
    %c0_i32_98 = arith.constant 0 : i32
    %191 = vector.broadcast %c0_i32_98 : i32 to vector<32x16xi32>
    %192 = arith.cmpi slt, %188, %191 : vector<32x16xi32>
    %c0_i32_99 = arith.constant 0 : i32
    %193 = arith.cmpi slt, %186, %c0_i32_99 : i32
    %194 = vector.broadcast %193 : i1 to vector<32x16xi1>
    %195 = vector.broadcast %194 : vector<32x16xi1> to vector<32x16xi1>
    %196 = arith.xori %192, %195 : vector<32x16xi1>
    %197 = arith.andi %196, %190 : vector<32x16xi1>
    %198 = vector.broadcast %186 : i32 to vector<32x16xi32>
    %199 = arith.addi %188, %198 : vector<32x16xi32>
    %200 = arith.select %197, %199, %188 : vector<32x16xi1>, vector<32x16xi32>
    %c0_i32_100 = arith.constant 0 : i32
    %201 = vector.broadcast %c0_i32_100 : i32 to vector<32x16xi32>
    %202 = arith.cmpi ne, %200, %201 : vector<32x16xi32>
    %c1_i32_101 = arith.constant 1 : i32
    %203 = tpu.dynamic_rotate %183 by %c1_i32_101 dim 0 : vector<32x16xf32>, i32 -> vector<32x16xf32>
    %cst_102 = arith.constant 0.000000e+00 : f32
    %204 = vector.broadcast %cst_102 : f32 to vector<32x16xf32>
    %205 = arith.select %202, %203, %204 : vector<32x16xi1>, vector<32x16xf32>
    %c16_i32_103 = arith.constant 16 : i32
    %c0_i32_104 = arith.constant 0 : i32
    %206 = arith.cmpi eq, %c16_i32_103, %c0_i32_104 : i32
    %c1_i32_105 = arith.constant 1 : i32
    %207 = arith.select %206, %c1_i32_105, %c16_i32_103 : i32
    %208 = vector.broadcast %207 : i32 to vector<32x16xi32>
    %209 = arith.remsi %184, %208 : vector<32x16xi32>
    %c0_i32_106 = arith.constant 0 : i32
    %210 = vector.broadcast %c0_i32_106 : i32 to vector<32x16xi32>
    %211 = arith.cmpi ne, %209, %210 : vector<32x16xi32>
    %c0_i32_107 = arith.constant 0 : i32
    %212 = vector.broadcast %c0_i32_107 : i32 to vector<32x16xi32>
    %213 = arith.cmpi slt, %209, %212 : vector<32x16xi32>
    %c0_i32_108 = arith.constant 0 : i32
    %214 = arith.cmpi slt, %207, %c0_i32_108 : i32
    %215 = vector.broadcast %214 : i1 to vector<32x16xi1>
    %216 = vector.broadcast %215 : vector<32x16xi1> to vector<32x16xi1>
    %217 = arith.xori %213, %216 : vector<32x16xi1>
    %218 = arith.andi %217, %211 : vector<32x16xi1>
    %219 = vector.broadcast %207 : i32 to vector<32x16xi32>
    %220 = arith.addi %209, %219 : vector<32x16xi32>
    %221 = arith.select %218, %220, %209 : vector<32x16xi1>, vector<32x16xi32>
    %c15_i32_109 = arith.constant 15 : i32
    %222 = vector.broadcast %c15_i32_109 : i32 to vector<32x16xi32>
    %223 = arith.cmpi ne, %221, %222 : vector<32x16xi32>
    %c31_i32_110 = arith.constant 31 : i32
    %224 = tpu.dynamic_rotate %183 by %c31_i32_110 dim 0 : vector<32x16xf32>, i32 -> vector<32x16xf32>
    %cst_111 = arith.constant 0.000000e+00 : f32
    %225 = vector.broadcast %cst_111 : f32 to vector<32x16xf32>
    %226 = arith.select %223, %224, %225 : vector<32x16xi1>, vector<32x16xf32>
    %c0_112 = arith.constant 0 : index
    %c0_113 = arith.constant 0 : index
    %c0_114 = arith.constant 0 : index
    %227 = vector.load %arg5[%c0_112, %c0_113, %c0_114] : memref<3x16x16xf32, #tpu.memory_space<vmem>>, vector<1x16x16xf32>
    %228 = vector.shape_cast %227 : vector<1x16x16xf32> to vector<16x16xf32>
    %cst_115 = arith.constant dense<0.000000e+00> : vector<32x16xf32>
    %229 = tpu.matmul %205, %228, %cst_115 {dimension_numbers = #tpu.dot_dimension_numbers<[1], [0], [0], [1], [0, 0, 1, 1], [], []>} : vector<32x16xf32>, vector<16x16xf32>, vector<32x16xf32> -> vector<32x16xf32>
    %c1_116 = arith.constant 1 : index
    %c0_117 = arith.constant 0 : index
    %c0_118 = arith.constant 0 : index
    %230 = vector.load %arg5[%c1_116, %c0_117, %c0_118] : memref<3x16x16xf32, #tpu.memory_space<vmem>>, vector<1x16x16xf32>
    %231 = vector.shape_cast %230 : vector<1x16x16xf32> to vector<16x16xf32>
    %cst_119 = arith.constant dense<0.000000e+00> : vector<32x16xf32>
    %232 = tpu.matmul %183, %231, %cst_119 {dimension_numbers = #tpu.dot_dimension_numbers<[1], [0], [0], [1], [0, 0, 1, 1], [], []>} : vector<32x16xf32>, vector<16x16xf32>, vector<32x16xf32> -> vector<32x16xf32>
    %233 = arith.addf %229, %232 : vector<32x16xf32>
    %c2_120 = arith.constant 2 : index
    %c0_121 = arith.constant 0 : index
    %c0_122 = arith.constant 0 : index
    %234 = vector.load %arg5[%c2_120, %c0_121, %c0_122] : memref<3x16x16xf32, #tpu.memory_space<vmem>>, vector<1x16x16xf32>
    %235 = vector.shape_cast %234 : vector<1x16x16xf32> to vector<16x16xf32>
    %cst_123 = arith.constant dense<0.000000e+00> : vector<32x16xf32>
    %236 = tpu.matmul %226, %235, %cst_123 {dimension_numbers = #tpu.dot_dimension_numbers<[1], [0], [0], [1], [0, 0, 1, 1], [], []>} : vector<32x16xf32>, vector<16x16xf32>, vector<32x16xf32> -> vector<32x16xf32>
    %237 = arith.addf %233, %236 : vector<32x16xf32>
    %cst_124 = arith.constant 0.000000e+00 : f32
    %238 = vector.broadcast %cst_124 : f32 to vector<32x16xf32>
    %239 = arith.cmpf oge, %237, %238 : vector<32x16xf32>
    %cst_125 = arith.constant 2.000000e-01 : f32
    %240 = vector.broadcast %cst_125 : f32 to vector<32x16xf32>
    %241 = arith.mulf %240, %237 : vector<32x16xf32>
    %242 = arith.select %239, %237, %241 : vector<32x16xi1>, vector<32x16xf32>
    %c0_126 = arith.constant 0 : index
    %c0_127 = arith.constant 0 : index
    %243 = vector.load %arg13[%c0_126, %c0_127] : memref<32x16xf32, #tpu.memory_space<vmem>>, vector<32x16xf32>
    tpu.vector_store %arg13[%c0_126, %c0_127], %242 {strides = array<i32>} : memref<32x16xf32, #tpu.memory_space<vmem>>, vector<32x16xf32>,
    %c0_128 = arith.constant 0 : index
    %c0_129 = arith.constant 0 : index
    %244 = tpu.strided_load %arg13[%c0_128, %c0_129] {strides = array<i32: 2, 1>} : memref<32x16xf32, #tpu.memory_space<vmem>>, vector<16x16xf32>
    %c1_130 = arith.constant 1 : index
    %c0_131 = arith.constant 0 : index
    %245 = tpu.strided_load %arg13[%c1_130, %c0_131] {strides = array<i32: 2, 1>} : memref<32x16xf32, #tpu.memory_space<vmem>>, vector<16x16xf32>
    %246 = arith.addf %244, %245 : vector<16x16xf32>
    %cst_132 = arith.constant 5.000000e-01 : f32
    %247 = vector.broadcast %cst_132 : f32 to vector<16x16xf32>
    %248 = arith.mulf %247, %246 : vector<16x16xf32>
    %249 = tpu.iota {dimensions = array<i32: 0>} : vector<16x16xi32>
    %c8_i32 = arith.constant 8 : i32
    %c0_i32_133 = arith.constant 0 : i32
    %250 = arith.cmpi eq, %c8_i32, %c0_i32_133 : i32
    %c1_i32_134 = arith.constant 1 : i32
    %251 = arith.select %250, %c1_i32_134, %c8_i32 : i32
    %252 = vector.broadcast %251 : i32 to vector<16x16xi32>
    %253 = arith.remsi %249, %252 : vector<16x16xi32>
    %c0_i32_135 = arith.constant 0 : i32
    %254 = vector.broadcast %c0_i32_135 : i32 to vector<16x16xi32>
    %255 = arith.cmpi ne, %253, %254 : vector<16x16xi32>
    %c0_i32_136 = arith.constant 0 : i32
    %256 = vector.broadcast %c0_i32_136 : i32 to vector<16x16xi32>
    %257 = arith.cmpi slt, %253, %256 : vector<16x16xi32>
    %c0_i32_137 = arith.constant 0 : i32
    %258 = arith.cmpi slt, %251, %c0_i32_137 : i32
    %259 = vector.broadcast %258 : i1 to vector<16x16xi1>
    %260 = vector.broadcast %259 : vector<16x16xi1> to vector<16x16xi1>
    %261 = arith.xori %257, %260 : vector<16x16xi1>
    %262 = arith.andi %261, %255 : vector<16x16xi1>
    %263 = vector.broadcast %251 : i32 to vector<16x16xi32>
    %264 = arith.addi %253, %263 : vector<16x16xi32>
    %265 = arith.select %262, %264, %253 : vector<16x16xi1>, vector<16x16xi32>
    %c0_i32_138 = arith.constant 0 : i32
    %266 = vector.broadcast %c0_i32_138 : i32 to vector<16x16xi32>
    %267 = arith.cmpi ne, %265, %266 : vector<16x16xi32>
    %c1_i32_139 = arith.constant 1 : i32
    %268 = tpu.dynamic_rotate %248 by %c1_i32_139 dim 0 : vector<16x16xf32>, i32 -> vector<16x16xf32>
    %cst_140 = arith.constant 0.000000e+00 : f32
    %269 = vector.broadcast %cst_140 : f32 to vector<16x16xf32>
    %270 = arith.select %267, %268, %269 : vector<16x16xi1>, vector<16x16xf32>
    %c8_i32_141 = arith.constant 8 : i32
    %c0_i32_142 = arith.constant 0 : i32
    %271 = arith.cmpi eq, %c8_i32_141, %c0_i32_142 : i32
    %c1_i32_143 = arith.constant 1 : i32
    %272 = arith.select %271, %c1_i32_143, %c8_i32_141 : i32
    %273 = vector.broadcast %272 : i32 to vector<16x16xi32>
    %274 = arith.remsi %249, %273 : vector<16x16xi32>
    %c0_i32_144 = arith.constant 0 : i32
    %275 = vector.broadcast %c0_i32_144 : i32 to vector<16x16xi32>
    %276 = arith.cmpi ne, %274, %275 : vector<16x16xi32>
    %c0_i32_145 = arith.constant 0 : i32
    %277 = vector.broadcast %c0_i32_145 : i32 to vector<16x16xi32>
    %278 = arith.cmpi slt, %274, %277 : vector<16x16xi32>
    %c0_i32_146 = arith.constant 0 : i32
    %279 = arith.cmpi slt, %272, %c0_i32_146 : i32
    %280 = vector.broadcast %279 : i1 to vector<16x16xi1>
    %281 = vector.broadcast %280 : vector<16x16xi1> to vector<16x16xi1>
    %282 = arith.xori %278, %281 : vector<16x16xi1>
    %283 = arith.andi %282, %276 : vector<16x16xi1>
    %284 = vector.broadcast %272 : i32 to vector<16x16xi32>
    %285 = arith.addi %274, %284 : vector<16x16xi32>
    %286 = arith.select %283, %285, %274 : vector<16x16xi1>, vector<16x16xi32>
    %c7_i32 = arith.constant 7 : i32
    %287 = vector.broadcast %c7_i32 : i32 to vector<16x16xi32>
    %288 = arith.cmpi ne, %286, %287 : vector<16x16xi32>
    %c15_i32_147 = arith.constant 15 : i32
    %289 = tpu.dynamic_rotate %248 by %c15_i32_147 dim 0 : vector<16x16xf32>, i32 -> vector<16x16xf32>
    %cst_148 = arith.constant 0.000000e+00 : f32
    %290 = vector.broadcast %cst_148 : f32 to vector<16x16xf32>
    %291 = arith.select %288, %289, %290 : vector<16x16xi1>, vector<16x16xf32>
    %c0_149 = arith.constant 0 : index
    %c0_150 = arith.constant 0 : index
    %c0_151 = arith.constant 0 : index
    %292 = vector.load %arg6[%c0_149, %c0_150, %c0_151] : memref<3x16x32xf32, #tpu.memory_space<vmem>>, vector<1x16x32xf32>
    %293 = vector.shape_cast %292 : vector<1x16x32xf32> to vector<16x32xf32>
    %cst_152 = arith.constant dense<0.000000e+00> : vector<16x32xf32>
    %294 = tpu.matmul %270, %293, %cst_152 {dimension_numbers = #tpu.dot_dimension_numbers<[1], [0], [0], [1], [0, 0, 1, 1], [], []>} : vector<16x16xf32>, vector<16x32xf32>, vector<16x32xf32> -> vector<16x32xf32>
    %c1_153 = arith.constant 1 : index
    %c0_154 = arith.constant 0 : index
    %c0_155 = arith.constant 0 : index
    %295 = vector.load %arg6[%c1_153, %c0_154, %c0_155] : memref<3x16x32xf32, #tpu.memory_space<vmem>>, vector<1x16x32xf32>
    %296 = vector.shape_cast %295 : vector<1x16x32xf32> to vector<16x32xf32>
    %cst_156 = arith.constant dense<0.000000e+00> : vector<16x32xf32>
    %297 = tpu.matmul %248, %296, %cst_156 {dimension_numbers = #tpu.dot_dimension_numbers<[1], [0], [0], [1], [0, 0, 1, 1], [], []>} : vector<16x16xf32>, vector<16x32xf32>, vector<16x32xf32> -> vector<16x32xf32>
    %298 = arith.addf %294, %297 : vector<16x32xf32>
    %c2_157 = arith.constant 2 : index
    %c0_158 = arith.constant 0 : index
    %c0_159 = arith.constant 0 : index
    %299 = vector.load %arg6[%c2_157, %c0_158, %c0_159] : memref<3x16x32xf32, #tpu.memory_space<vmem>>, vector<1x16x32xf32>
    %300 = vector.shape_cast %299 : vector<1x16x32xf32> to vector<16x32xf32>
    %cst_160 = arith.constant dense<0.000000e+00> : vector<16x32xf32>
    %301 = tpu.matmul %291, %300, %cst_160 {dimension_numbers = #tpu.dot_dimension_numbers<[1], [0], [0], [1], [0, 0, 1, 1], [], []>} : vector<16x16xf32>, vector<16x32xf32>, vector<16x32xf32> -> vector<16x32xf32>
    %302 = arith.addf %298, %301 : vector<16x32xf32>
    %cst_161 = arith.constant 0.000000e+00 : f32
    %303 = vector.broadcast %cst_161 : f32 to vector<16x32xf32>
    %304 = arith.cmpf oge, %302, %303 : vector<16x32xf32>
    %cst_162 = arith.constant 2.000000e-01 : f32
    %305 = vector.broadcast %cst_162 : f32 to vector<16x32xf32>
    %306 = arith.mulf %305, %302 : vector<16x32xf32>
    %307 = arith.select %304, %302, %306 : vector<16x32xi1>, vector<16x32xf32>
    %308 = tpu.iota {dimensions = array<i32: 0>} : vector<16x32xi32>
    %c8_i32_163 = arith.constant 8 : i32
    %c0_i32_164 = arith.constant 0 : i32
    %309 = arith.cmpi eq, %c8_i32_163, %c0_i32_164 : i32
    %c1_i32_165 = arith.constant 1 : i32
    %310 = arith.select %309, %c1_i32_165, %c8_i32_163 : i32
    %311 = vector.broadcast %310 : i32 to vector<16x32xi32>
    %312 = arith.remsi %308, %311 : vector<16x32xi32>
    %c0_i32_166 = arith.constant 0 : i32
    %313 = vector.broadcast %c0_i32_166 : i32 to vector<16x32xi32>
    %314 = arith.cmpi ne, %312, %313 : vector<16x32xi32>
    %c0_i32_167 = arith.constant 0 : i32
    %315 = vector.broadcast %c0_i32_167 : i32 to vector<16x32xi32>
    %316 = arith.cmpi slt, %312, %315 : vector<16x32xi32>
    %c0_i32_168 = arith.constant 0 : i32
    %317 = arith.cmpi slt, %310, %c0_i32_168 : i32
    %318 = vector.broadcast %317 : i1 to vector<16x32xi1>
    %319 = vector.broadcast %318 : vector<16x32xi1> to vector<16x32xi1>
    %320 = arith.xori %316, %319 : vector<16x32xi1>
    %321 = arith.andi %320, %314 : vector<16x32xi1>
    %322 = vector.broadcast %310 : i32 to vector<16x32xi32>
    %323 = arith.addi %312, %322 : vector<16x32xi32>
    %324 = arith.select %321, %323, %312 : vector<16x32xi1>, vector<16x32xi32>
    %c0_i32_169 = arith.constant 0 : i32
    %325 = vector.broadcast %c0_i32_169 : i32 to vector<16x32xi32>
    %326 = arith.cmpi ne, %324, %325 : vector<16x32xi32>
    %c1_i32_170 = arith.constant 1 : i32
    %327 = tpu.dynamic_rotate %307 by %c1_i32_170 dim 0 : vector<16x32xf32>, i32 -> vector<16x32xf32>
    %cst_171 = arith.constant 0.000000e+00 : f32
    %328 = vector.broadcast %cst_171 : f32 to vector<16x32xf32>
    %329 = arith.select %326, %327, %328 : vector<16x32xi1>, vector<16x32xf32>
    %c8_i32_172 = arith.constant 8 : i32
    %c0_i32_173 = arith.constant 0 : i32
    %330 = arith.cmpi eq, %c8_i32_172, %c0_i32_173 : i32
    %c1_i32_174 = arith.constant 1 : i32
    %331 = arith.select %330, %c1_i32_174, %c8_i32_172 : i32
    %332 = vector.broadcast %331 : i32 to vector<16x32xi32>
    %333 = arith.remsi %308, %332 : vector<16x32xi32>
    %c0_i32_175 = arith.constant 0 : i32
    %334 = vector.broadcast %c0_i32_175 : i32 to vector<16x32xi32>
    %335 = arith.cmpi ne, %333, %334 : vector<16x32xi32>
    %c0_i32_176 = arith.constant 0 : i32
    %336 = vector.broadcast %c0_i32_176 : i32 to vector<16x32xi32>
    %337 = arith.cmpi slt, %333, %336 : vector<16x32xi32>
    %c0_i32_177 = arith.constant 0 : i32
    %338 = arith.cmpi slt, %331, %c0_i32_177 : i32
    %339 = vector.broadcast %338 : i1 to vector<16x32xi1>
    %340 = vector.broadcast %339 : vector<16x32xi1> to vector<16x32xi1>
    %341 = arith.xori %337, %340 : vector<16x32xi1>
    %342 = arith.andi %341, %335 : vector<16x32xi1>
    %343 = vector.broadcast %331 : i32 to vector<16x32xi32>
    %344 = arith.addi %333, %343 : vector<16x32xi32>
    %345 = arith.select %342, %344, %333 : vector<16x32xi1>, vector<16x32xi32>
    %c7_i32_178 = arith.constant 7 : i32
    %346 = vector.broadcast %c7_i32_178 : i32 to vector<16x32xi32>
    %347 = arith.cmpi ne, %345, %346 : vector<16x32xi32>
    %c15_i32_179 = arith.constant 15 : i32
    %348 = tpu.dynamic_rotate %307 by %c15_i32_179 dim 0 : vector<16x32xf32>, i32 -> vector<16x32xf32>
    %cst_180 = arith.constant 0.000000e+00 : f32
    %349 = vector.broadcast %cst_180 : f32 to vector<16x32xf32>
    %350 = arith.select %347, %348, %349 : vector<16x32xi1>, vector<16x32xf32>
    %c0_181 = arith.constant 0 : index
    %c0_182 = arith.constant 0 : index
    %c0_183 = arith.constant 0 : index
    %351 = vector.load %arg7[%c0_181, %c0_182, %c0_183] : memref<3x32x32xf32, #tpu.memory_space<vmem>>, vector<1x32x32xf32>
    %352 = vector.shape_cast %351 : vector<1x32x32xf32> to vector<32x32xf32>
    %cst_184 = arith.constant dense<0.000000e+00> : vector<16x32xf32>
    %353 = tpu.matmul %329, %352, %cst_184 {dimension_numbers = #tpu.dot_dimension_numbers<[1], [0], [0], [1], [0, 0, 1, 1], [], []>} : vector<16x32xf32>, vector<32x32xf32>, vector<16x32xf32> -> vector<16x32xf32>
    %c1_185 = arith.constant 1 : index
    %c0_186 = arith.constant 0 : index
    %c0_187 = arith.constant 0 : index
    %354 = vector.load %arg7[%c1_185, %c0_186, %c0_187] : memref<3x32x32xf32, #tpu.memory_space<vmem>>, vector<1x32x32xf32>
    %355 = vector.shape_cast %354 : vector<1x32x32xf32> to vector<32x32xf32>
    %cst_188 = arith.constant dense<0.000000e+00> : vector<16x32xf32>
    %356 = tpu.matmul %307, %355, %cst_188 {dimension_numbers = #tpu.dot_dimension_numbers<[1], [0], [0], [1], [0, 0, 1, 1], [], []>} : vector<16x32xf32>, vector<32x32xf32>, vector<16x32xf32> -> vector<16x32xf32>
    %357 = arith.addf %353, %356 : vector<16x32xf32>
    %c2_189 = arith.constant 2 : index
    %c0_190 = arith.constant 0 : index
    %c0_191 = arith.constant 0 : index
    %358 = vector.load %arg7[%c2_189, %c0_190, %c0_191] : memref<3x32x32xf32, #tpu.memory_space<vmem>>, vector<1x32x32xf32>
    %359 = vector.shape_cast %358 : vector<1x32x32xf32> to vector<32x32xf32>
    %cst_192 = arith.constant dense<0.000000e+00> : vector<16x32xf32>
    %360 = tpu.matmul %350, %359, %cst_192 {dimension_numbers = #tpu.dot_dimension_numbers<[1], [0], [0], [1], [0, 0, 1, 1], [], []>} : vector<16x32xf32>, vector<32x32xf32>, vector<16x32xf32> -> vector<16x32xf32>
    %361 = arith.addf %357, %360 : vector<16x32xf32>
    %cst_193 = arith.constant 0.000000e+00 : f32
    %362 = vector.broadcast %cst_193 : f32 to vector<16x32xf32>
    %363 = arith.cmpf oge, %361, %362 : vector<16x32xf32>
    %cst_194 = arith.constant 2.000000e-01 : f32
    %364 = vector.broadcast %cst_194 : f32 to vector<16x32xf32>
    %365 = arith.mulf %364, %361 : vector<16x32xf32>
    %366 = arith.select %363, %361, %365 : vector<16x32xi1>, vector<16x32xf32>
    %c0_195 = arith.constant 0 : index
    %c0_196 = arith.constant 0 : index
    %367 = vector.load %arg14[%c0_195, %c0_196] : memref<16x32xf32, #tpu.memory_space<vmem>>, vector<16x32xf32>
    tpu.vector_store %arg14[%c0_195, %c0_196], %366 {strides = array<i32>} : memref<16x32xf32, #tpu.memory_space<vmem>>, vector<16x32xf32>,
    %c0_197 = arith.constant 0 : index
    %c0_198 = arith.constant 0 : index
    %368 = tpu.strided_load %arg14[%c0_197, %c0_198] {strides = array<i32: 2, 1>} : memref<16x32xf32, #tpu.memory_space<vmem>>, vector<8x32xf32>
    %c1_199 = arith.constant 1 : index
    %c0_200 = arith.constant 0 : index
    %369 = tpu.strided_load %arg14[%c1_199, %c0_200] {strides = array<i32: 2, 1>} : memref<16x32xf32, #tpu.memory_space<vmem>>, vector<8x32xf32>
    %370 = arith.addf %368, %369 : vector<8x32xf32>
    %cst_201 = arith.constant 5.000000e-01 : f32
    %371 = vector.broadcast %cst_201 : f32 to vector<8x32xf32>
    %372 = arith.mulf %371, %370 : vector<8x32xf32>
    %373 = tpu.iota {dimensions = array<i32: 0>} : vector<8x32xi32>
    %c4_i32 = arith.constant 4 : i32
    %c0_i32_202 = arith.constant 0 : i32
    %374 = arith.cmpi eq, %c4_i32, %c0_i32_202 : i32
    %c1_i32_203 = arith.constant 1 : i32
    %375 = arith.select %374, %c1_i32_203, %c4_i32 : i32
    %376 = vector.broadcast %375 : i32 to vector<8x32xi32>
    %377 = arith.remsi %373, %376 : vector<8x32xi32>
    %c0_i32_204 = arith.constant 0 : i32
    %378 = vector.broadcast %c0_i32_204 : i32 to vector<8x32xi32>
    %379 = arith.cmpi ne, %377, %378 : vector<8x32xi32>
    %c0_i32_205 = arith.constant 0 : i32
    %380 = vector.broadcast %c0_i32_205 : i32 to vector<8x32xi32>
    %381 = arith.cmpi slt, %377, %380 : vector<8x32xi32>
    %c0_i32_206 = arith.constant 0 : i32
    %382 = arith.cmpi slt, %375, %c0_i32_206 : i32
    %383 = vector.broadcast %382 : i1 to vector<8x32xi1>
    %384 = vector.broadcast %383 : vector<8x32xi1> to vector<8x32xi1>
    %385 = arith.xori %381, %384 : vector<8x32xi1>
    %386 = arith.andi %385, %379 : vector<8x32xi1>
    %387 = vector.broadcast %375 : i32 to vector<8x32xi32>
    %388 = arith.addi %377, %387 : vector<8x32xi32>
    %389 = arith.select %386, %388, %377 : vector<8x32xi1>, vector<8x32xi32>
    %c0_i32_207 = arith.constant 0 : i32
    %390 = vector.broadcast %c0_i32_207 : i32 to vector<8x32xi32>
    %391 = arith.cmpi ne, %389, %390 : vector<8x32xi32>
    %c1_i32_208 = arith.constant 1 : i32
    %392 = tpu.dynamic_rotate %372 by %c1_i32_208 dim 0 : vector<8x32xf32>, i32 -> vector<8x32xf32>
    %cst_209 = arith.constant 0.000000e+00 : f32
    %393 = vector.broadcast %cst_209 : f32 to vector<8x32xf32>
    %394 = arith.select %391, %392, %393 : vector<8x32xi1>, vector<8x32xf32>
    %c4_i32_210 = arith.constant 4 : i32
    %c0_i32_211 = arith.constant 0 : i32
    %395 = arith.cmpi eq, %c4_i32_210, %c0_i32_211 : i32
    %c1_i32_212 = arith.constant 1 : i32
    %396 = arith.select %395, %c1_i32_212, %c4_i32_210 : i32
    %397 = vector.broadcast %396 : i32 to vector<8x32xi32>
    %398 = arith.remsi %373, %397 : vector<8x32xi32>
    %c0_i32_213 = arith.constant 0 : i32
    %399 = vector.broadcast %c0_i32_213 : i32 to vector<8x32xi32>
    %400 = arith.cmpi ne, %398, %399 : vector<8x32xi32>
    %c0_i32_214 = arith.constant 0 : i32
    %401 = vector.broadcast %c0_i32_214 : i32 to vector<8x32xi32>
    %402 = arith.cmpi slt, %398, %401 : vector<8x32xi32>
    %c0_i32_215 = arith.constant 0 : i32
    %403 = arith.cmpi slt, %396, %c0_i32_215 : i32
    %404 = vector.broadcast %403 : i1 to vector<8x32xi1>
    %405 = vector.broadcast %404 : vector<8x32xi1> to vector<8x32xi1>
    %406 = arith.xori %402, %405 : vector<8x32xi1>
    %407 = arith.andi %406, %400 : vector<8x32xi1>
    %408 = vector.broadcast %396 : i32 to vector<8x32xi32>
    %409 = arith.addi %398, %408 : vector<8x32xi32>
    %410 = arith.select %407, %409, %398 : vector<8x32xi1>, vector<8x32xi32>
    %c3_i32 = arith.constant 3 : i32
    %411 = vector.broadcast %c3_i32 : i32 to vector<8x32xi32>
    %412 = arith.cmpi ne, %410, %411 : vector<8x32xi32>
    %c7_i32_216 = arith.constant 7 : i32
    %413 = tpu.dynamic_rotate %372 by %c7_i32_216 dim 0 : vector<8x32xf32>, i32 -> vector<8x32xf32>
    %cst_217 = arith.constant 0.000000e+00 : f32
    %414 = vector.broadcast %cst_217 : f32 to vector<8x32xf32>
    %415 = arith.select %412, %413, %414 : vector<8x32xi1>, vector<8x32xf32>
    %c0_218 = arith.constant 0 : index
    %c0_219 = arith.constant 0 : index
    %c0_220 = arith.constant 0 : index
    %416 = vector.load %arg8[%c0_218, %c0_219, %c0_220] : memref<3x32x64xf32, #tpu.memory_space<vmem>>, vector<1x32x64xf32>
    %417 = vector.shape_cast %416 : vector<1x32x64xf32> to vector<32x64xf32>
    %cst_221 = arith.constant dense<0.000000e+00> : vector<8x64xf32>
    %418 = tpu.matmul %394, %417, %cst_221 {dimension_numbers = #tpu.dot_dimension_numbers<[1], [0], [0], [1], [0, 0, 1, 1], [], []>} : vector<8x32xf32>, vector<32x64xf32>, vector<8x64xf32> -> vector<8x64xf32>
    %c1_222 = arith.constant 1 : index
    %c0_223 = arith.constant 0 : index
    %c0_224 = arith.constant 0 : index
    %419 = vector.load %arg8[%c1_222, %c0_223, %c0_224] : memref<3x32x64xf32, #tpu.memory_space<vmem>>, vector<1x32x64xf32>
    %420 = vector.shape_cast %419 : vector<1x32x64xf32> to vector<32x64xf32>
    %cst_225 = arith.constant dense<0.000000e+00> : vector<8x64xf32>
    %421 = tpu.matmul %372, %420, %cst_225 {dimension_numbers = #tpu.dot_dimension_numbers<[1], [0], [0], [1], [0, 0, 1, 1], [], []>} : vector<8x32xf32>, vector<32x64xf32>, vector<8x64xf32> -> vector<8x64xf32>
    %422 = arith.addf %418, %421 : vector<8x64xf32>
    %c2_226 = arith.constant 2 : index
    %c0_227 = arith.constant 0 : index
    %c0_228 = arith.constant 0 : index
    %423 = vector.load %arg8[%c2_226, %c0_227, %c0_228] : memref<3x32x64xf32, #tpu.memory_space<vmem>>, vector<1x32x64xf32>
    %424 = vector.shape_cast %423 : vector<1x32x64xf32> to vector<32x64xf32>
    %cst_229 = arith.constant dense<0.000000e+00> : vector<8x64xf32>
    %425 = tpu.matmul %415, %424, %cst_229 {dimension_numbers = #tpu.dot_dimension_numbers<[1], [0], [0], [1], [0, 0, 1, 1], [], []>} : vector<8x32xf32>, vector<32x64xf32>, vector<8x64xf32> -> vector<8x64xf32>
    %426 = arith.addf %422, %425 : vector<8x64xf32>
    %cst_230 = arith.constant 0.000000e+00 : f32
    %427 = vector.broadcast %cst_230 : f32 to vector<8x64xf32>
    %428 = arith.cmpf oge, %426, %427 : vector<8x64xf32>
    %cst_231 = arith.constant 2.000000e-01 : f32
    %429 = vector.broadcast %cst_231 : f32 to vector<8x64xf32>
    %430 = arith.mulf %429, %426 : vector<8x64xf32>
    %431 = arith.select %428, %426, %430 : vector<8x64xi1>, vector<8x64xf32>
    %432 = tpu.iota {dimensions = array<i32: 0>} : vector<8x64xi32>
    %c4_i32_232 = arith.constant 4 : i32
    %c0_i32_233 = arith.constant 0 : i32
    %433 = arith.cmpi eq, %c4_i32_232, %c0_i32_233 : i32
    %c1_i32_234 = arith.constant 1 : i32
    %434 = arith.select %433, %c1_i32_234, %c4_i32_232 : i32
    %435 = vector.broadcast %434 : i32 to vector<8x64xi32>
    %436 = arith.remsi %432, %435 : vector<8x64xi32>
    %c0_i32_235 = arith.constant 0 : i32
    %437 = vector.broadcast %c0_i32_235 : i32 to vector<8x64xi32>
    %438 = arith.cmpi ne, %436, %437 : vector<8x64xi32>
    %c0_i32_236 = arith.constant 0 : i32
    %439 = vector.broadcast %c0_i32_236 : i32 to vector<8x64xi32>
    %440 = arith.cmpi slt, %436, %439 : vector<8x64xi32>
    %c0_i32_237 = arith.constant 0 : i32
    %441 = arith.cmpi slt, %434, %c0_i32_237 : i32
    %442 = vector.broadcast %441 : i1 to vector<8x64xi1>
    %443 = vector.broadcast %442 : vector<8x64xi1> to vector<8x64xi1>
    %444 = arith.xori %440, %443 : vector<8x64xi1>
    %445 = arith.andi %444, %438 : vector<8x64xi1>
    %446 = vector.broadcast %434 : i32 to vector<8x64xi32>
    %447 = arith.addi %436, %446 : vector<8x64xi32>
    %448 = arith.select %445, %447, %436 : vector<8x64xi1>, vector<8x64xi32>
    %c0_i32_238 = arith.constant 0 : i32
    %449 = vector.broadcast %c0_i32_238 : i32 to vector<8x64xi32>
    %450 = arith.cmpi ne, %448, %449 : vector<8x64xi32>
    %c1_i32_239 = arith.constant 1 : i32
    %451 = tpu.dynamic_rotate %431 by %c1_i32_239 dim 0 : vector<8x64xf32>, i32 -> vector<8x64xf32>
    %cst_240 = arith.constant 0.000000e+00 : f32
    %452 = vector.broadcast %cst_240 : f32 to vector<8x64xf32>
    %453 = arith.select %450, %451, %452 : vector<8x64xi1>, vector<8x64xf32>
    %c4_i32_241 = arith.constant 4 : i32
    %c0_i32_242 = arith.constant 0 : i32
    %454 = arith.cmpi eq, %c4_i32_241, %c0_i32_242 : i32
    %c1_i32_243 = arith.constant 1 : i32
    %455 = arith.select %454, %c1_i32_243, %c4_i32_241 : i32
    %456 = vector.broadcast %455 : i32 to vector<8x64xi32>
    %457 = arith.remsi %432, %456 : vector<8x64xi32>
    %c0_i32_244 = arith.constant 0 : i32
    %458 = vector.broadcast %c0_i32_244 : i32 to vector<8x64xi32>
    %459 = arith.cmpi ne, %457, %458 : vector<8x64xi32>
    %c0_i32_245 = arith.constant 0 : i32
    %460 = vector.broadcast %c0_i32_245 : i32 to vector<8x64xi32>
    %461 = arith.cmpi slt, %457, %460 : vector<8x64xi32>
    %c0_i32_246 = arith.constant 0 : i32
    %462 = arith.cmpi slt, %455, %c0_i32_246 : i32
    %463 = vector.broadcast %462 : i1 to vector<8x64xi1>
    %464 = vector.broadcast %463 : vector<8x64xi1> to vector<8x64xi1>
    %465 = arith.xori %461, %464 : vector<8x64xi1>
    %466 = arith.andi %465, %459 : vector<8x64xi1>
    %467 = vector.broadcast %455 : i32 to vector<8x64xi32>
    %468 = arith.addi %457, %467 : vector<8x64xi32>
    %469 = arith.select %466, %468, %457 : vector<8x64xi1>, vector<8x64xi32>
    %c3_i32_247 = arith.constant 3 : i32
    %470 = vector.broadcast %c3_i32_247 : i32 to vector<8x64xi32>
    %471 = arith.cmpi ne, %469, %470 : vector<8x64xi32>
    %c7_i32_248 = arith.constant 7 : i32
    %472 = tpu.dynamic_rotate %431 by %c7_i32_248 dim 0 : vector<8x64xf32>, i32 -> vector<8x64xf32>
    %cst_249 = arith.constant 0.000000e+00 : f32
    %473 = vector.broadcast %cst_249 : f32 to vector<8x64xf32>
    %474 = arith.select %471, %472, %473 : vector<8x64xi1>, vector<8x64xf32>
    %c0_250 = arith.constant 0 : index
    %c0_251 = arith.constant 0 : index
    %c0_252 = arith.constant 0 : index
    %475 = vector.load %arg9[%c0_250, %c0_251, %c0_252] : memref<3x64x64xf32, #tpu.memory_space<vmem>>, vector<1x64x64xf32>
    %476 = vector.shape_cast %475 : vector<1x64x64xf32> to vector<64x64xf32>
    %cst_253 = arith.constant dense<0.000000e+00> : vector<8x64xf32>
    %477 = tpu.matmul %453, %476, %cst_253 {dimension_numbers = #tpu.dot_dimension_numbers<[1], [0], [0], [1], [0, 0, 1, 1], [], []>} : vector<8x64xf32>, vector<64x64xf32>, vector<8x64xf32> -> vector<8x64xf32>
    %c1_254 = arith.constant 1 : index
    %c0_255 = arith.constant 0 : index
    %c0_256 = arith.constant 0 : index
    %478 = vector.load %arg9[%c1_254, %c0_255, %c0_256] : memref<3x64x64xf32, #tpu.memory_space<vmem>>, vector<1x64x64xf32>
    %479 = vector.shape_cast %478 : vector<1x64x64xf32> to vector<64x64xf32>
    %cst_257 = arith.constant dense<0.000000e+00> : vector<8x64xf32>
    %480 = tpu.matmul %431, %479, %cst_257 {dimension_numbers = #tpu.dot_dimension_numbers<[1], [0], [0], [1], [0, 0, 1, 1], [], []>} : vector<8x64xf32>, vector<64x64xf32>, vector<8x64xf32> -> vector<8x64xf32>
    %481 = arith.addf %477, %480 : vector<8x64xf32>
    %c2_258 = arith.constant 2 : index
    %c0_259 = arith.constant 0 : index
    %c0_260 = arith.constant 0 : index
    %482 = vector.load %arg9[%c2_258, %c0_259, %c0_260] : memref<3x64x64xf32, #tpu.memory_space<vmem>>, vector<1x64x64xf32>
    %483 = vector.shape_cast %482 : vector<1x64x64xf32> to vector<64x64xf32>
    %cst_261 = arith.constant dense<0.000000e+00> : vector<8x64xf32>
    %484 = tpu.matmul %474, %483, %cst_261 {dimension_numbers = #tpu.dot_dimension_numbers<[1], [0], [0], [1], [0, 0, 1, 1], [], []>} : vector<8x64xf32>, vector<64x64xf32>, vector<8x64xf32> -> vector<8x64xf32>
    %485 = arith.addf %481, %484 : vector<8x64xf32>
    %cst_262 = arith.constant 0.000000e+00 : f32
    %486 = vector.broadcast %cst_262 : f32 to vector<8x64xf32>
    %487 = arith.cmpf oge, %485, %486 : vector<8x64xf32>
    %cst_263 = arith.constant 2.000000e-01 : f32
    %488 = vector.broadcast %cst_263 : f32 to vector<8x64xf32>
    %489 = arith.mulf %488, %485 : vector<8x64xf32>
    %490 = arith.select %487, %485, %489 : vector<8x64xi1>, vector<8x64xf32>
    %c0_264 = arith.constant 0 : index
    %c0_265 = arith.constant 0 : index
    %491 = vector.load %arg15[%c0_264, %c0_265] : memref<8x64xf32, #tpu.memory_space<vmem>>, vector<8x64xf32>
    tpu.vector_store %arg15[%c0_264, %c0_265], %490 {strides = array<i32>} : memref<8x64xf32, #tpu.memory_space<vmem>>, vector<8x64xf32>,
    %c0_266 = arith.constant 0 : index
    %c0_267 = arith.constant 0 : index
    %492 = tpu.strided_load %arg15[%c0_266, %c0_267] {strides = array<i32: 2, 1>} : memref<8x64xf32, #tpu.memory_space<vmem>>, vector<4x64xf32>
    %c1_268 = arith.constant 1 : index
    %c0_269 = arith.constant 0 : index
    %493 = tpu.strided_load %arg15[%c1_268, %c0_269] {strides = array<i32: 2, 1>} : memref<8x64xf32, #tpu.memory_space<vmem>>, vector<4x64xf32>
    %494 = arith.addf %492, %493 : vector<4x64xf32>
    %cst_270 = arith.constant 5.000000e-01 : f32
    %495 = vector.broadcast %cst_270 : f32 to vector<4x64xf32>
    %496 = arith.mulf %495, %494 : vector<4x64xf32>
    %c3_i32_271 = arith.constant 3 : i32
    %497 = tpu.dynamic_rotate %496 by %c3_i32_271 dim 0 : vector<4x64xf32>, i32 -> vector<4x64xf32>
    %c0_272 = arith.constant 0 : index
    %c0_273 = arith.constant 0 : index
    %c0_274 = arith.constant 0 : index
    %498 = vector.load %arg10[%c0_272, %c0_273, %c0_274] : memref<2x1x64xf32, #tpu.memory_space<vmem>>, vector<1x1x64xf32>
    %499 = vector.shape_cast %498 : vector<1x1x64xf32> to vector<1x64xf32>
    "tpu.trace_start"() <{level = 10 : i32, message = "oc,mc->om"}> : () -> ()
    %cst_275 = arith.constant dense<0.000000e+00> : vector<1x4xf32>
    %500 = tpu.matmul %499, %496, %cst_275 {dimension_numbers = #tpu.dot_dimension_numbers<[1], [1], [0], [0], [0, 0, 1, 0], [], []>} : vector<1x64xf32>, vector<4x64xf32>, vector<1x4xf32> -> vector<1x4xf32>
    "tpu.trace_stop"() : () -> ()
    %c1_276 = arith.constant 1 : index
    %c0_277 = arith.constant 0 : index
    %c0_278 = arith.constant 0 : index
    %501 = vector.load %arg10[%c1_276, %c0_277, %c0_278] : memref<2x1x64xf32, #tpu.memory_space<vmem>>, vector<1x1x64xf32>
    %502 = vector.shape_cast %501 : vector<1x1x64xf32> to vector<1x64xf32>
    "tpu.trace_start"() <{level = 10 : i32, message = "oc,mc->om"}> : () -> ()
    %cst_279 = arith.constant dense<0.000000e+00> : vector<1x4xf32>
    %503 = tpu.matmul %502, %497, %cst_279 {dimension_numbers = #tpu.dot_dimension_numbers<[1], [1], [0], [0], [0, 0, 1, 0], [], []>} : vector<1x64xf32>, vector<4x64xf32>, vector<1x4xf32> -> vector<1x4xf32>
    "tpu.trace_stop"() : () -> ()
    %504 = arith.addf %500, %503 : vector<1x4xf32>
    %505 = vector.shape_cast %504 : vector<1x4xf32> to vector<1x1x4xf32>
    %c0_280 = arith.constant 0 : index
    %c0_281 = arith.constant 0 : index
    %c0_282 = arith.constant 0 : index
    %506 = vector.load %arg11[%c0_280, %c0_281, %c0_282] : memref<1x1x4xf32, #tpu.memory_space<vmem>>, vector<1x1x4xf32>
    tpu.vector_store %arg11[%c0_280, %c0_281, %c0_282], %505 {strides = array<i32>} : memref<1x1x4xf32, #tpu.memory_space<vmem>>, vector<1x1x4xf32>,
    return
  }
  func.func @transform_0(%arg0: i32) -> (i32, i32) {
    %c0_i32 = arith.constant 0 : i32
    %c0_i32_0 = arith.constant 0 : i32
    return %arg0, %c0_i32 : i32, i32
  }
  func.func @transform_1(%arg0: i32) -> (i32, i32, i32) {
    %c0_i32 = arith.constant 0 : i32
    %c0_i32_0 = arith.constant 0 : i32
    %c0_i32_1 = arith.constant 0 : i32
    %c0_i32_2 = arith.constant 0 : i32
    return %c0_i32, %c0_i32_0, %c0_i32_1 : i32, i32, i32
  }
  func.func @transform_2(%arg0: i32) -> (i32, i32, i32) {
    %c0_i32 = arith.constant 0 : i32
    %c0_i32_0 = arith.constant 0 : i32
    %c0_i32_1 = arith.constant 0 : i32
    %c0_i32_2 = arith.constant 0 : i32
    return %c0_i32, %c0_i32_0, %c0_i32_1 : i32, i32, i32
  }
  func.func @transform_3(%arg0: i32) -> (i32, i32, i32) {
    %c0_i32 = arith.constant 0 : i32
    %c0_i32_0 = arith.constant 0 : i32
    %c0_i32_1 = arith.constant 0 : i32
    %c0_i32_2 = arith.constant 0 : i32
    return %c0_i32, %c0_i32_0, %c0_i32_1 : i32, i32, i32
  }
  func.func @transform_4(%arg0: i32) -> (i32, i32, i32) {
    %c0_i32 = arith.constant 0 : i32
    %c0_i32_0 = arith.constant 0 : i32
    %c0_i32_1 = arith.constant 0 : i32
    %c0_i32_2 = arith.constant 0 : i32
    return %c0_i32, %c0_i32_0, %c0_i32_1 : i32, i32, i32
  }
  func.func @transform_5(%arg0: i32) -> (i32, i32, i32) {
    %c0_i32 = arith.constant 0 : i32
    %c0_i32_0 = arith.constant 0 : i32
    %c0_i32_1 = arith.constant 0 : i32
    %c0_i32_2 = arith.constant 0 : i32
    return %c0_i32, %c0_i32_0, %c0_i32_1 : i32, i32, i32
  }
  func.func @transform_6(%arg0: i32) -> (i32, i32, i32) {
    %c0_i32 = arith.constant 0 : i32
    %c0_i32_0 = arith.constant 0 : i32
    %c0_i32_1 = arith.constant 0 : i32
    %c0_i32_2 = arith.constant 0 : i32
    return %c0_i32, %c0_i32_0, %c0_i32_1 : i32, i32, i32
  }
  func.func @transform_7(%arg0: i32) -> (i32, i32, i32) {
    %c0_i32 = arith.constant 0 : i32
    %c0_i32_0 = arith.constant 0 : i32
    %c0_i32_1 = arith.constant 0 : i32
    %c0_i32_2 = arith.constant 0 : i32
    return %c0_i32, %c0_i32_0, %c0_i32_1 : i32, i32, i32
  }
  func.func @transform_8(%arg0: i32) -> (i32, i32, i32) {
    %c0_i32 = arith.constant 0 : i32
    %c0_i32_0 = arith.constant 0 : i32
    %c0_i32_1 = arith.constant 0 : i32
    %c0_i32_2 = arith.constant 0 : i32
    return %c0_i32, %c0_i32_0, %c0_i32_1 : i32, i32, i32
  }
  func.func @transform_9(%arg0: i32) -> (i32, i32, i32) {
    %c0_i32 = arith.constant 0 : i32
    %c0_i32_0 = arith.constant 0 : i32
    %c0_i32_1 = arith.constant 0 : i32
    %c0_i32_2 = arith.constant 0 : i32
    return %c0_i32, %c0_i32_0, %c0_i32_1 : i32, i32, i32
  }
  func.func @transform_10(%arg0: i32) -> (i32, i32, i32) {
    %c0_i32 = arith.constant 0 : i32
    %c0_i32_0 = arith.constant 0 : i32
    %c0_i32_1 = arith.constant 0 : i32
    return %arg0, %c0_i32, %c0_i32_0 : i32, i32, i32
  }
}

</mosaic_0001>

<bundles_post_ra>
// kernel: forward.1
= control target key start
LH: loop header
LB: loop body
LE: loop exit
PB: predicated region body
PF: predicated region fallthrough
CT: control target
= control target key end

     0   :  { %vm242_vm0 = vcmask 1041408   ;;  %vm217_vm1 = vcmask 15360   ;;  %v43_v0 = vlaneseq  ;;  %vm700_vm10 = vcmask 64512   ;;  %s4668_s1 = inlined_call_operand.vmem [shape: f32[3,2,8], index: 1, kind: input, shape index: {}]   ;;  %s4669_s0 = inlined_call_operand.vmem [shape: f32[64,2], index: 0, kind: input, shape index: {}]   ;;  %s4670_s2 = inlined_call_operand.vmem [shape: f32[3,8,8], index: 2, kind: input, shape index: {}]   ;;  %s4671_s3 = inlined_call_operand.vmem [shape: f32[3,8,16], index: 3, kind: input, shape index: {}]   ;;  %s4672_s4 = inlined_call_operand.vmem [shape: f32[3,16,16], index: 4, kind: input, shape index: {}]   ;;  %s4673_s5 = inlined_call_operand.vmem [shape: f32[3,16,32], index: 5, kind: input, shape index: {}]   ;;  %s4674_s6 = inlined_call_operand.vmem [shape: f32[3,32,32], index: 6, kind: input, shape index: {}]   ;;  %s4675_s7 = inlined_call_operand.vmem [shape: f32[3,32,64], index: 7, kind: input, shape index: {}]   ;;  %s4676_s8 = inlined_call_operand.vmem [shape: f32[3,64,64], index: 8, kind: input, shape index: {}]   ;;  %s4677_s9 = inlined_call_operand.vmem [shape: f32[2,1,64], index: 9, kind: input, shape index: {}]   ;;  %s4678_s10 = inlined_call_operand.vmem [shape: f32[1,1,4], index: 10, kind: output, shape index: {}]  }
   0x1   :  { %v3166_v1 = vld [vmem:[%s4668_s1 + $0x2] sm:$0x3]  ;;  %v4007_v3 = vld [vmem:[%s4669_s0 + $0x8] sm:$0xff]  ;;  %v214_v4 = vld [vmem:[%s4668_s1] sm:$0x3] }
   0x2   :  { %v4002_v2 = vld [vmem:[%s4669_s0] sm:$0xff]  ;;  %3473 = vmatprep.subr.msk.mxu0 %vm242_vm0, %v3166_v1  ;;  %v4019_v5 = vld [vmem:[%s4669_s0 + $0x10] sm:$0xff]  ;;  %v4021_v6 = vshrl.u32 %v43_v0, 7  ;;  %v38_v7 = vld [vmem:[%s4669_s0 + $0x18] sm:$0xff]  ;;  %v157_v19 = vrot.slane %v4007_v3, 7  ;;  %v190_v35 = vrot.slane %v4007_v3, 1 }
   0x3   :  { %3475 = vmatprep.mubr.msk.f32.mxu0 %vm217_vm1, %v4002_v2  ;;  %3474 = vmatpush3.msk.msra.mxu0 %vm242_vm0, %v3166_v1  ;;  %v4035_v8 = vld [vmem:[%s4669_s0 + $0x38] sm:$0xff]  ;;  %v4040_v9 = vld [vmem:[%s4669_s0 + $0x20] sm:$0xff]  ;;  %v156_v11 = vrot.slane %v4002_v2, 7  ;;  %v40_v14 = vld [vmem:[%s4669_s0 + $0x28] sm:$0xff]  ;;  %v158_v20 = vrot.slane %v4019_v5, 7  ;;  %v159_v24 = vrot.slane %v38_v7, 7 }
   0x4   :  { %3476 = vmatmul.mubr.msk.f32.vlgmr.msra.gmra.mrb[0].mxu0 %vm217_vm1, %v4007_v3  ;;  %3487 = vmatprep.subr.msk.mxu0 %vm242_vm0, %v214_v4  ;;  %v3185_v10 = vld [vmem:[%s4668_s1 + $0x4] sm:$0x3]  ;;  %v163_v12 = vrot.slane %v4035_v8, 7  ;;  %v56_v13 = vand.u32 31, %v4021_v6  ;;  %vm164_vm2 = vcmp.lt.s32.totalorder %v4021_v6, 1  ;;  %v41_v15 = vld [vmem:[%s4669_s0 + $0x30] sm:$0xff] }
   0x5   :  { %3488 = vmatpush3.msk.msra.mxu0 %vm242_vm0, %v214_v4  ;;  %3478 = vmatprep.mubr.msk.f32.mxu0 %vm217_vm1, %v4019_v5  ;;  %v48_v18 = vadd.s32 32, %v4021_v6  ;;  %v160_v22 = vrot.slane %v4040_v9, 7  ;;  %v171_v25 = vsel %vm164_vm2, %v156_v11, %v157_v19  ;;  %v170_v26 = vsel %vm164_vm2, %v157_v19, %v158_v20  ;;  %v3195_v60 = vld [vmem:[%s4670_s2 + $0x8] sm:$0xff]  ;;  %v4157_v61 = vld [vmem:[%s4670_s2] sm:$0xff]  ;;  %v3235_v57 = vld [vmem:[%s4672_s4 + $0x10] sm:$0xff] }
   0x6   :  { %3501 = vmatprep.subr.msk.mxu0 %vm242_vm0, %v3185_v10  ;;  %vm4059_vm3 = vcmp.ne.s32.totalorder %v56_v13, 0  ;;  %v172_v17 = vsel %vm164_vm2, %v163_v12, %v156_v11  ;;  %v161_v29 = vrot.slane %v40_v14, 7  ;;  %v169_v30 = vsel %vm164_vm2, %v158_v20, %v159_v24  ;;  %3867 = vmatprep.subr.mxu1 %v3195_v60  ;;  %v4237_v47 = vld [vmem:[%s4671_s3] sm:$0xff] }
   0x7   :  { %v173_v21 = vsel %vm4059_vm3, %v172_v17, 0.0  ;;  %v84_v23 = vand.u32 31, %v48_v18  ;;  %v168_v28 = vsel %vm164_vm2, %v159_v24, %v160_v22  ;;  %v162_v31 = vrot.slane %v41_v15, 7  ;;  %3868 = vmatpush3.msra.mxu1 %v3195_v60 }
   0x8   :  { %3479 = vmatmul.mubr.msk.f32.gmra.mrb[2].mxu0 %vm217_vm1, %v38_v7  ;;  %v167_v33 = vsel %vm164_vm2, %v160_v22, %v161_v29  ;;  %v189_v34 = vrot.slane %v4002_v2, 1  ;;  %v4102_v37 = vadd.s32 24, %v4021_v6  ;;  %vm197_vm5 = vcmp.lt.s32.totalorder %v4021_v6, 7  ;;  %3529 = vmatprep.subr.mxu1 %v4157_v61 }
   0x9   :  { %3481 = vmatprep.mubr.msk.f32.mxu0 %vm217_vm1, %v4040_v9  ;;  %vm4080_vm4 = vcmp.ne.s32.totalorder %v84_v23, 0  ;;  %v166_v36 = vsel %vm164_vm2, %v161_v29, %v162_v31  ;;  %v191_v38 = vrot.slane %v4019_v5, 1  ;;  %v165_v39 = vsel %vm164_vm2, %v162_v31, %v163_v12 }
   0xa   :  { %v177_v32 = vsel %vm4080_vm4, %v168_v28, 0.0  ;;  %v192_v40 = vrot.slane %v38_v7, 1  ;;  %v193_v41 = vrot.slane %v4040_v9, 1  ;;  %v204_v42 = vsel %vm197_vm5, %v189_v34, %v190_v35 }
   0xb   :  { %v77_v43 = vand.u32 31, %v4102_v37  ;;  %v194_v44 = vrot.slane %v40_v14, 1  ;;  %v203_v45 = vsel %vm197_vm5, %v190_v35, %v191_v38  ;;  %v51_v49 = vadd.s32 56, %v4021_v6 }
   0xc   :  { %3482 = vmatmul.mubr.msk.f32.gmra.mrb[4].mxu0 %vm217_vm1, %v40_v14  ;;  %v202_v46 = vsel %vm197_vm5, %v191_v38, %v192_v40  ;;  %v201_v48 = vsel %vm197_vm5, %v192_v40, %v193_v41  ;;  %v195_v50 = vrot.slane %v41_v15, 1  ;;  %v196_v52 = vrot.slane %v4035_v8, 1 }
   0xd   :  { %3484 = vmatprep.mubr.msk.f32.mxu0 %vm217_vm1, %v41_v15  ;;  %vm4120_vm6 = vcmp.ne.s32.totalorder %v77_v43, 31  ;;  %v200_v53 = vsel %vm197_vm5, %v193_v41, %v194_v44  ;;  %v105_v54 = vand.u32 31, %v51_v49 }
   0xe   :  { %v209_v51 = vsel %vm4120_vm6, %v201_v48, 0.0  ;;  %v199_v55 = vsel %vm197_vm5, %v194_v44, %v195_v50  ;;  %v198_v56 = vsel %vm197_vm5, %v195_v50, %v196_v52  ;;  %v205_v58 = vsel %vm197_vm5, %v196_v52, %v189_v34  ;;  %v3212_v52 = vld [vmem:[%s4670_s2 + $0x10] sm:$0xff] }
   0xf   :  { %vm4140_vm7 = vcmp.ne.s32.totalorder %v105_v54, 31 }
  0x10   :  { %3485 = vmatmul.mubr.msk.f32.gmra.mrb[6].mxu0 %vm217_vm1, %v4035_v8  ;;  %v213_v59 = vsel %vm4140_vm7, %v205_v58, 0.0 }
  0x11   :  { %3489 = vmatprep.mubr.msk.f32.mxu0 %vm217_vm1, %v173_v21 }
  0x14   :  { %3490 = vmatmul.mubr.msk.f32.vlgmr.msra.gmra.mrb[0].mxu0 %vm217_vm1, %v171_v25 }
  0x15   :  { %3502 = vmatpush3.msk.msra.mxu0 %vm242_vm0, %v3185_v10  ;;  %3492 = vmatprep.mubr.msk.f32.mxu0 %vm217_vm1, %v170_v26 }
  0x16   :  { %3515 = vmatprep.subr.mxu0 %v3195_v60 }
  0x18   :  { %3493 = vmatmul.mubr.msk.f32.gmra.mrb[2].mxu0 %vm217_vm1, %v169_v30 }
  0x19   :  { %3495 = vmatprep.mubr.msk.f32.mxu0 %vm217_vm1, %v177_v32 }
  0x1c   :  { %3496 = vmatmul.mubr.msk.f32.gmra.mrb[4].mxu0 %vm217_vm1, %v167_v33 }
  0x1d   :  { %3498 = vmatprep.mubr.msk.f32.mxu0 %vm217_vm1, %v166_v36 }
  0x20   :  { %3499 = vmatmul.mubr.msk.f32.gmra.mrb[6].mxu0 %vm217_vm1, %v165_v39 }
  0x21   :  { %3503 = vmatprep.mubr.msk.f32.mxu0 %vm217_vm1, %v204_v42 }
  0x24   :  { %3504 = vmatmul.mubr.msk.f32.vlgmr.msra.gmra.mrb[0].mxu0 %vm217_vm1, %v203_v45 }
  0x25   :  { %3506 = vmatprep.mubr.msk.f32.mxu0 %vm217_vm1, %v202_v46  ;;  %3516 = vmatpush3.msra.mxu0 %v3195_v60 }
  0x28   :  { %3507 = vmatmul.mubr.msk.f32.gmra.mrb[2].mxu0 %vm217_vm1, %v209_v51 }
  0x29   :  { %3509 = vmatprep.mubr.msk.f32.mxu0 %vm217_vm1, %v200_v53 }
  0x2c   :  { %3510 = vmatmul.mubr.msk.f32.gmra.mrb[4].mxu0 %vm217_vm1, %v199_v55 }
  0x2d   :  { %3512 = vmatprep.mubr.msk.f32.mxu0 %vm217_vm1, %v198_v56 }
  0x30   :  { %3513 = vmatmul.mubr.msk.f32.gmra.mrb[6].mxu0 %vm217_vm1, %v213_v59 }
  0xf7   :  { %v3505_v62 = vpop.f32.mrb[0].mxu0 }
  0xf8   :  { %vm626_vm8 = vcmp.ge.f32.partialorder %v3505_v62, 0.0  ;;  %v634_v63 = vmul.f32 0.2, %v3505_v62  ;;  %v578_v0 = vpop.f32.mrb[1].mxu0 }
  0xf9   :  { %vm625_vm9 = vcmp.ge.f32.partialorder %v578_v0, 0.0  ;;  %v633_v1 = vmul.f32 0.2, %v578_v0 }
  0xfa   :  { %v642_v2 = vsel %vm626_vm8, %v3505_v62, %v634_v63  ;;  %v3221_v63 = vld [vmem:[%s4671_s3 + $0x8] sm:$0xff] }
  0xfb   :  { %v650_v3 = vrot.slane %v642_v2, 7  ;;  %v674_v4 = vrot.slane %v642_v2, 1  ;;  %v3508_v5 = vpop.f32.mrb[2].mxu0  ;;  %v641_v7 = vsel %vm625_vm9, %v578_v0, %v633_v1  ;;  %3557 = vmatprep.subr.mxu0 %v3221_v63  ;;  %v3236_v0 = vld [vmem:[%s4672_s4 + $0x18] sm:$0xff] }
  0xfc   :  { %vm628_vm11 = vcmp.ge.f32.partialorder %v3508_v5, 0.0  ;;  %v636_v8 = vmul.f32 0.2, %v3508_v5  ;;  %v588_v9 = vpop.f32.mrb[3].mxu0  ;;  %v649_v10 = vrot.slane %v641_v7, 7  ;;  %v673_v11 = vrot.slane %v641_v7, 1  ;;  %3517 = vmatprep.mubr.msk.f32.mxu0 %vm700_vm10, %v641_v7 }
  0xfd   :  { %vm627_vm12 = vcmp.ge.f32.partialorder %v588_v9, 0.0  ;;  %v635_v12 = vmul.f32 0.2, %v588_v9  ;;  %3518 = vmatmul.mubr.msk.f32.vlgmr.msra.gmra.mrb[8].mxu0 %vm700_vm10, %v642_v2  ;;  %v3765_v1 = vpack.c.bf16 %v3236_v0, %v3235_v57 }
  0xfe   :  { %v644_v13 = vsel %vm628_vm11, %v3508_v5, %v636_v8  ;;  %v663_v14 = vsel %vm164_vm2, %v649_v10, %v650_v3  ;;  %v4166_v15 = vsel %vm197_vm5, %v673_v11, %v674_v4  ;;  %3558 = vmatpush3.msra.mxu0 %v3221_v63  ;;  %v4264_v63 = vadd.s32 8, %v4021_v6 }
  0xff   :  { %v3511_v17 = vpop.f32.mrb[4].mxu0  ;;  %v643_v18 = vsel %vm627_vm12, %v588_v9, %v635_v12  ;;  %v652_v19 = vrot.slane %v644_v13, 7  ;;  %v676_v20 = vrot.slane %v644_v13, 1  ;;  %3565 = vmatprep.subr.mxu0 %v4237_v47 }
 0x100   :  { %vm630_vm13 = vcmp.ge.f32.partialorder %v3511_v17, 0.0  ;;  %v638_v21 = vmul.f32 0.2, %v3511_v17  ;;  %v598_v22 = vpop.f32.mrb[5].mxu0  ;;  %v651_v23 = vrot.slane %v643_v18, 7  ;;  %v675_v24 = vrot.slane %v643_v18, 1  ;;  %3520 = vmatprep.mubr.msk.f32.mxu0 %vm700_vm10, %v643_v18 }
 0x101   :  { %vm629_vm14 = vcmp.ge.f32.partialorder %v598_v22, 0.0  ;;  %v637_v25 = vmul.f32 0.2, %v598_v22  ;;  %3521 = vmatmul.mubr.msk.f32.gmra.mrb[10].mxu0 %vm700_vm10, %v644_v13 }
 0x102   :  { %v646_v26 = vsel %vm630_vm13, %v3511_v17, %v638_v21  ;;  %v662_v28 = vsel %vm164_vm2, %v650_v3, %v651_v23  ;;  %v661_v29 = vsel %vm164_vm2, %v651_v23, %v652_v19  ;;  %v686_v30 = vsel %vm197_vm5, %v674_v4, %v675_v24 }
 0x103   :  { %v3514_v31 = vpop.f32.mrb[6].mxu0  ;;  %v645_v32 = vsel %vm629_vm14, %v598_v22, %v637_v25  ;;  %v654_v33 = vrot.slane %v646_v26, 7  ;;  %v678_v34 = vrot.slane %v646_v26, 1  ;;  %v685_v35 = vsel %vm197_vm5, %v675_v24, %v676_v20 }
 0x104   :  { %vm632_vm15 = vcmp.ge.f32.partialorder %v3514_v31, 0.0  ;;  %v640_v36 = vmul.f32 0.2, %v3514_v31  ;;  %v608_v38 = vpop.f32.mrb[7].mxu0  ;;  %v653_v39 = vrot.slane %v645_v32, 7  ;;  %v677_v40 = vrot.slane %v645_v32, 1  ;;  %3523 = vmatprep.mubr.msk.f32.mxu0 %vm700_vm10, %v645_v32 }
 0x105   :  { %vm631_vm0 = vcmp.ge.f32.partialorder %v608_v38, 0.0  ;;  %v639_v41 = vmul.f32 0.2, %v608_v38  ;;  %3524 = vmatmul.mubr.msk.f32.gmra.mrb[12].mxu0 %vm700_vm10, %v646_v26 }
 0x106   :  { %v648_v42 = vsel %vm632_vm15, %v3514_v31, %v640_v36  ;;  %v660_v43 = vsel %vm164_vm2, %v652_v19, %v653_v39  ;;  %v659_v44 = vsel %vm164_vm2, %v653_v39, %v654_v33  ;;  %v684_v45 = vsel %vm197_vm5, %v676_v20, %v677_v40 }
 0x107   :  { %v647_v46 = vsel %vm631_vm0, %v608_v38, %v639_v41  ;;  %v656_v48 = vrot.slane %v648_v42, 7  ;;  %v680_v49 = vrot.slane %v648_v42, 1  ;;  %v683_v53 = vsel %vm197_vm5, %v677_v40, %v678_v34 }
 0x108   :  { %v655_v50 = vrot.slane %v647_v46, 7  ;;  %v679_v51 = vrot.slane %v647_v46, 1  ;;  %3526 = vmatprep.mubr.msk.f32.mxu1 %vm700_vm10, %v647_v46  ;;  %v669_v16 = vsel %vm4080_vm4, %v660_v43, 0.0 }
 0x109   :  { %3527 = vmatmul.mubr.msk.f32.vlgmr.msra.gmra.mrb[0].mxu1 %vm700_vm10, %v648_v42  ;;  %v664_v54 = vsel %vm164_vm2, %v656_v48, %v649_v10  ;;  %v688_v55 = vsel %vm197_vm5, %v680_v49, %v673_v11 }
 0x10a   :  { %3530 = vmatpush3.msra.mxu1 %v4157_v61  ;;  %v665_v56 = vsel %vm4059_vm3, %v664_v54, 0.0  ;;  %v658_v58 = vsel %vm164_vm2, %v654_v33, %v655_v50  ;;  %v657_v59 = vsel %vm164_vm2, %v655_v50, %v656_v48  ;;  %v682_v60 = vsel %vm197_vm5, %v678_v34, %v679_v51 }
 0x10b   :  { %3531 = vmatprep.mubr.msk.f32.mxu1 %vm700_vm10, %v665_v56  ;;  %3543 = vmatprep.subr.mxu1 %v3212_v52  ;;  %v681_v62 = vsel %vm197_vm5, %v679_v51, %v680_v49  ;;  %v692_v61 = vsel %vm4120_vm6, %v684_v45, 0.0  ;;  %v696_v27 = vsel %vm4140_vm7, %v688_v55, 0.0  ;;  %v46_v55 = vadd.s32 16, %v4021_v6 }
 0x10d   :  { %3532 = vmatmul.mubr.msk.f32.vlgmr.msra.gmra.mrb[2].mxu1 %vm700_vm10, %v663_v14 }
 0x10e   :  { %3534 = vmatprep.mubr.msk.f32.mxu1 %vm700_vm10, %v662_v28  ;;  %3544 = vmatpush3.msra.mxu1 %v3212_v52 }
 0x10f   :  { %3766 = vmatprep.subr.bf16.mxu1 %v3765_v1 }
 0x111   :  { %3535 = vmatmul.mubr.msk.f32.gmra.mrb[4].mxu1 %vm700_vm10, %v661_v29 }
 0x112   :  { %3537 = vmatprep.mubr.msk.f32.mxu1 %vm700_vm10, %v669_v16 }
 0x115   :  { %3538 = vmatmul.mubr.msk.f32.gmra.mrb[6].mxu1 %vm700_vm10, %v659_v44 }
 0x116   :  { %3540 = vmatprep.mubr.msk.f32.mxu1 %vm700_vm10, %v658_v58 }
 0x119   :  { %3541 = vmatmul.mubr.msk.f32.gmra.mrb[0].mxu1 %vm700_vm10, %v657_v59 }
 0x11a   :  { %3545 = vmatprep.mubr.msk.f32.mxu1 %vm700_vm10, %v4166_v15 }
 0x11d   :  { %3546 = vmatmul.mubr.msk.f32.vlgmr.msra.gmra.mrb[2].mxu1 %vm700_vm10, %v686_v30 }
 0x11e   :  { %3548 = vmatprep.mubr.msk.f32.mxu1 %vm700_vm10, %v685_v35  ;;  %3768 = vmatpush3.bf16.msra.mxu1 %v3765_v1 }
 0x121   :  { %3549 = vmatmul.mubr.msk.f32.gmra.mrb[4].mxu1 %vm700_vm10, %v692_v61  ;;  %v1171_v61 = vand.u32 15, %v46_v55 }
 0x122   :  { %3551 = vmatprep.mubr.msk.f32.mxu1 %vm700_vm10, %v683_v53  ;;  %v3230_v53 = vld [vmem:[%s4671_s3 + $0x10] sm:$0xff] }
 0x123   :  { %vm4273_vm13 = vcmp.ne.s32.totalorder %v1171_v61, 0 }
 0x125   :  { %3552 = vmatmul.mubr.msk.f32.gmra.mrb[6].mxu1 %vm700_vm10, %v682_v60 }
 0x126   :  { %3554 = vmatprep.mubr.msk.f32.mxu1 %vm700_vm10, %v681_v62  ;;  %v1157_v62 = vand.u32 15, %v4021_v6 }
 0x128   :  { %vm4267_vm12 = vcmp.ne.s32.totalorder %v1157_v62, 0 }
 0x129   :  { %3555 = vmatmul.mubr.msk.f32.gmra.mrb[0].mxu1 %vm700_vm10, %v696_v27 }
 0x1d0   :  { %v3519_v2 = vpop.f32.mrb[8].mxu0 }
 0x1d1   :  { %v791_v3 = vpop.f32.mrb[9].mxu0 }
 0x1d4   :  { %v3522_v4 = vpop.f32.mrb[10].mxu0 }
 0x1d5   :  { %v801_v5 = vpop.f32.mrb[11].mxu0 }
 0x1d8   :  { %v3525_v7 = vpop.f32.mrb[12].mxu0 }
 0x1d9   :  { %v811_v8 = vpop.f32.mrb[13].mxu0 }
 0x1f0   :  { %v3547_v9 = vpop.f32.mrb[2].mxu1 }
 0x1f1   :  { %v3869_v10 = vadd.f32 %v3547_v9, %v3519_v2  ;;  %v1051_v11 = vpop.f32.mrb[3].mxu1 }
 0x1f2   :  { %v3870_v12 = vadd.f32 %v1051_v11, %v791_v3  ;;  %v1941_v3 = vld [vmem:[%s4673_s5 + $0x8] sm:$0xff] }
 0x1f3   :  { %vm1099_vm1 = vcmp.ge.f32.partialorder %v3869_v10, 0.0  ;;  %v1107_v13 = vmul.f32 0.2, %v3869_v10 }
 0x1f4   :  { %vm1098_vm3 = vcmp.ge.f32.partialorder %v3870_v12, 0.0  ;;  %v1106_v14 = vmul.f32 0.2, %v3870_v12  ;;  %v3550_v15 = vpop.f32.mrb[4].mxu1 }
 0x1f5   :  { %v1115_v17 = vsel %vm1099_vm1, %v3869_v10, %v1107_v13  ;;  %v3871_v18 = vadd.f32 %v3550_v15, %v3522_v4  ;;  %v1061_v19 = vpop.f32.mrb[5].mxu1  ;;  %vm1574_vm1 = vcmask 130048  }
 0x1f6   :  { %1123 = vst.msk [vmem:[#allocation2 + $0x8] sm:$0xff] %vm700_vm10, %v1115_v17  ;;  %v1114_v20 = vsel %vm1098_vm3, %v3870_v12, %v1106_v14  ;;  %v3872_v21 = vadd.f32 %v1061_v19, %v801_v5  ;;  %v1178_v19 = vand.u32 15, %v4102_v37 }
 0x1f7   :  { %1122 = vst.msk [vmem:[#allocation2] sm:$0xff] %vm700_vm10, %v1114_v20  ;;  %vm1101_vm4 = vcmp.ge.f32.partialorder %v3871_v18, 0.0  ;;  %v1109_v22 = vmul.f32 0.2, %v3871_v18 }
 0x1f8   :  { %vm1100_vm6 = vcmp.ge.f32.partialorder %v3872_v21, 0.0  ;;  %v1108_v23 = vmul.f32 0.2, %v3872_v21  ;;  %v3553_v24 = vpop.f32.mrb[6].mxu1  ;;  %vm4307_vm15 = vcmp.ne.s32.totalorder %v1178_v19, 15 }
 0x1f9   :  { %v1117_v25 = vsel %vm1101_vm4, %v3871_v18, %v1109_v22  ;;  %v3873_v26 = vadd.f32 %v3553_v24, %v3525_v7  ;;  %v1071_v28 = vpop.f32.mrb[7].mxu1  ;;  %v1569_v24 = vld [vmem:[%s4672_s4] sm:$0xff] }
 0x1fa   :  { %1125 = vst.msk [vmem:[#allocation2 + $0x18] sm:$0xff] %vm700_vm10, %v1117_v25  ;;  %v1116_v29 = vsel %vm1100_vm6, %v3872_v21, %v1108_v23  ;;  %v3874_v30 = vadd.f32 %v1071_v28, %v811_v8  ;;  %v1164_v8 = vand.u32 15, %v4264_v63  ;;  %v1570_v25 = vld [vmem:[%s4672_s4 + $0x8] sm:$0xff] }
 0x1fb   :  { %1124 = vst.msk [vmem:[#allocation2 + $0x10] sm:$0xff] %vm700_vm10, %v1116_v29  ;;  %vm1103_vm7 = vcmp.ge.f32.partialorder %v3873_v26, 0.0  ;;  %v1111_v31 = vmul.f32 0.2, %v3873_v26 }
 0x1fc   :  { %vm1102_vm8 = vcmp.ge.f32.partialorder %v3874_v30, 0.0  ;;  %v1110_v32 = vmul.f32 0.2, %v3874_v30  ;;  %v3556_v33 = vpop.f32.mrb[0].mxu1  ;;  %vm4291_vm14 = vcmp.ne.s32.totalorder %v1164_v8, 15 }
 0x1fd   :  { %v1119_v34 = vsel %vm1103_vm7, %v3873_v26, %v1111_v31  ;;  %vm1105_vm9 = vcmp.ge.f32.partialorder %v3556_v33, 0.0  ;;  %v1113_v35 = vmul.f32 0.2, %v3556_v33  ;;  %v1081_v36 = vpop.f32.mrb[1].mxu1  ;;  %v3769_v26 = vpack.c.bf16 %v1570_v25, %v1569_v24  ;;  %v3245_v31 = vld [vmem:[%s4672_s4 + $0x20] sm:$0xff] }
 0x1fe   :  { %1127 = vst.msk [vmem:[#allocation2 + $0x28] sm:$0xff] %vm700_vm10, %v1119_v34  ;;  %v1118_v38 = vsel %vm1102_vm8, %v3874_v30, %v1110_v32  ;;  %vm1104_vm11 = vcmp.ge.f32.partialorder %v1081_v36, 0.0  ;;  %v1112_v39 = vmul.f32 0.2, %v1081_v36  ;;  %v1130_v40 = vld [vmem:[#allocation2] ss:$2 sm:$0xff] }
 0x1ff   :  { %1126 = vst.msk [vmem:[#allocation2 + $0x20] sm:$0xff] %vm700_vm10, %v1118_v38  ;;  %v1121_v41 = vsel %vm1105_vm9, %v3556_v33, %v1113_v35  ;;  %v1138_v42 = vld [vmem:[#allocation2 + $0x1] ss:$2 sm:$0xff]  ;;  %3770 = vmatprep.subr.bf16.mxu1 %v3769_v26 }
 0x200   :  { %1129 = vst.msk [vmem:[#allocation2 + $0x38] sm:$0xff] %vm700_vm10, %v1121_v41  ;;  %v1120_v43 = vsel %vm1104_vm11, %v1081_v36, %v1112_v39  ;;  %v1145_v44 = vadd.f32 %v1138_v42, %v1130_v40  ;;  %v3246_v32 = vld [vmem:[%s4672_s4 + $0x28] sm:$0xff]  ;;  %v3257_v25 = vld [vmem:[%s4673_s5 + $0x20] sm:$0xff] }
 0x201   :  { %1128 = vst.msk [vmem:[#allocation2 + $0x30] sm:$0xff] %vm700_vm10, %v1120_v43  ;;  %v3773_v40 = vpack.c.bf16 %v3246_v32, %v3245_v31  ;;  %v1904_v31 = vand.u32 7, %v4021_v6 }
 0x202   :  { %v1149_v45 = vmul.f32 0.5, %v1145_v44  ;;  %v1132_v46 = vld [vmem:[#allocation2 + $0x10] ss:$2 sm:$0xff]  ;;  %v1140_v48 = vld [vmem:[#allocation2 + $0x11] ss:$2 sm:$0xff] }
 0x203   :  { %v1146_v49 = vadd.f32 %v1140_v48, %v1132_v46  ;;  %vm4396_vm11 = vcmp.ne.s32.totalorder %v1904_v31, 0 }
 0x204   :  { %3559 = vmatprep.mubr.msk.f32.mxu0 %vm700_vm10, %v1149_v45  ;;  %v1221_v12 = vrot.slane %v1149_v45, 1 }
 0x205   :  { %v1150_v50 = vmul.f32 0.5, %v1146_v49 }
 0x206   :  { %v1134_v51 = vld [vmem:[#allocation2 + $0x20] ss:$2 sm:$0xff]  ;;  %v1142_v52 = vld [vmem:[#allocation2 + $0x21] ss:$2 sm:$0xff] }
 0x207   :  { %3560 = vmatmul.mubr.msk.f32.vlgmr.msra.gmra.mrb[14].mxu0 %vm700_vm10, %v1150_v50  ;;  %v1147_v54 = vadd.f32 %v1142_v52, %v1134_v51  ;;  %v1206_v1 = vrot.slane %v1150_v50, 7  ;;  %v1222_v11 = vrot.slane %v1150_v50, 1 }
 0x208   :  { %3566 = vmatpush3.msra.mxu0 %v4237_v47  ;;  %v1136_v56 = vld [vmem:[#allocation2 + $0x30] ss:$2 sm:$0xff]  ;;  %v1144_v58 = vld [vmem:[#allocation2 + $0x31] ss:$2 sm:$0xff]  ;;  %v1205_v47 = vrot.slane %v1149_v45, 7 }
 0x209   :  { %v1151_v59 = vmul.f32 0.5, %v1147_v54  ;;  %v1148_v60 = vadd.f32 %v1144_v58, %v1136_v56  ;;  %3573 = vmatprep.subr.mxu0 %v3230_v53  ;;  %v1227_v15 = vsel %vm197_vm5, %v1221_v12, %v1222_v11 }
 0x20a   :  { %v1211_v7 = vsel %vm164_vm2, %v1205_v47, %v1206_v1 }
 0x20b   :  { %3562 = vmatprep.mubr.msk.f32.mxu0 %vm700_vm10, %v1151_v59  ;;  %v1152_v16 = vmul.f32 0.5, %v1148_v60  ;;  %v1207_v27 = vrot.slane %v1151_v59, 7  ;;  %v1223_v9 = vrot.slane %v1151_v59, 1 }
 0x20d   :  { %3563 = vmatmul.mubr.msk.f32.gmra.mrb[16].mxu0 %vm700_vm10, %v1152_v16  ;;  %v1208_v0 = vrot.slane %v1152_v16, 7  ;;  %v1210_v4 = vsel %vm164_vm2, %v1206_v1, %v1207_v27  ;;  %v1226_v17 = vsel %vm197_vm5, %v1222_v11, %v1223_v9  ;;  %v1224_v18 = vrot.slane %v1152_v16, 1 }
 0x20e   :  { %v1215_v10 = vsel %vm4273_vm13, %v1210_v4, 0.0  ;;  %v1230_v20 = vsel %vm4291_vm14, %v1226_v17, 0.0 }
 0x20f   :  { %v1212_v2 = vsel %vm164_vm2, %v1208_v0, %v1205_v47  ;;  %v1209_v13 = vsel %vm164_vm2, %v1207_v27, %v1208_v0  ;;  %v1225_v21 = vsel %vm197_vm5, %v1223_v9, %v1224_v18  ;;  %v1228_v23 = vsel %vm197_vm5, %v1224_v18, %v1221_v12  ;;  %v3251_v47 = vld [vmem:[%s4673_s5 + $0x10] sm:$0xff]  ;;  %v3252_v0 = vld [vmem:[%s4673_s5 + $0x18] sm:$0xff] }
 0x210   :  { %v1213_v5 = vsel %vm4267_vm12, %v1212_v2, 0.0  ;;  %v1232_v37 = vsel %vm4307_vm15, %v1228_v23, 0.0  ;;  %v3777_v1 = vpack.c.bf16 %v3252_v0, %v3251_v47  ;;  %v1940_v2 = vld [vmem:[%s4673_s5] sm:$0xff] }
 0x211   :  { %3567 = vmatprep.mubr.msk.f32.mxu0 %vm700_vm10, %v1213_v5  ;;  %v3781_v4 = vpack.c.bf16 %v1941_v3, %v1940_v2  ;;  %v3261_v5 = vld [vmem:[%s4674_s6 + $0x20] sm:$0xff] }
 0x212   :  { %3568 = vmatmul.mubr.msk.f32.vlgmr.msra.gmra.mrb[14].mxu0 %vm700_vm10, %v1211_v7  ;;  %v3262_v7 = vld [vmem:[%s4674_s6 + $0x28] sm:$0xff] }
 0x213   :  { %3570 = vmatprep.mubr.msk.f32.mxu0 %vm700_vm10, %v1215_v10  ;;  %3574 = vmatpush3.msra.mxu0 %v3230_v53  ;;  %v3789_v8 = vpack.c.bf16 %v3262_v7, %v3261_v5  ;;  %v3269_v5 = vld [vmem:[%s4674_s6 + $0x40] sm:$0xff]  ;;  %v3270_v7 = vld [vmem:[%s4674_s6 + $0x48] sm:$0xff] }
 0x214   :  { %3778 = vmatprep.subr.bf16.mxu0 %v3777_v1 }
 0x216   :  { %3571 = vmatmul.mubr.msk.f32.gmra.mrb[16].mxu0 %vm700_vm10, %v1209_v13 }
 0x217   :  { %3575 = vmatprep.mubr.msk.f32.mxu0 %vm700_vm10, %v1227_v15 }
 0x21a   :  { %3576 = vmatmul.mubr.msk.f32.vlgmr.msra.gmra.mrb[14].mxu0 %vm700_vm10, %v1230_v20 }
 0x21b   :  { %3578 = vmatprep.mubr.msk.f32.mxu0 %vm700_vm10, %v1225_v21  ;;  %3780 = vmatpush3.bf16.msra.mxu0 %v3777_v1 }
 0x21c   :  { %3782 = vmatprep.subr.bf16.mxu0 %v3781_v4 }
 0x21e   :  { %3579 = vmatmul.mubr.msk.f32.gmra.mrb[16].mxu0 %vm700_vm10, %v1232_v37 }
 0x2ed   :  { %v3577_v28 = vpop.f32.mrb[14].mxu0 }
 0x2ee   :  { %vm1534_vm0 = vcmp.ge.f32.partialorder %v3577_v28, 0.0  ;;  %v1538_v29 = vmul.f32 0.2, %v3577_v28  ;;  %v1510_v30 = vpop.f32.mrb[15].mxu0 }
 0x2ef   :  { %vm1533_vm10 = vcmp.ge.f32.partialorder %v1510_v30, 0.0  ;;  %v1537_v33 = vmul.f32 0.2, %v1510_v30 }
 0x2f0   :  { %v1542_v34 = vsel %vm1534_vm0, %v3577_v28, %v1538_v29  ;;  %v3258_v29 = vld [vmem:[%s4673_s5 + $0x28] sm:$0xff] }
 0x2f1   :  { %v1546_v35 = vrot.slane %v1542_v34, 7  ;;  %v1558_v36 = vrot.slane %v1542_v34, 1  ;;  %v3580_v38 = vpop.f32.mrb[16].mxu0  ;;  %v1541_v39 = vsel %vm1533_vm10, %v1510_v30, %v1537_v33  ;;  %v3785_v33 = vpack.c.bf16 %v3258_v29, %v3257_v25  ;;  %v3286_v29 = vld [vmem:[%s4676_s8 + $0x40] sm:$0xff] }
 0x2f2   :  { %vm1536_vm3 = vcmp.ge.f32.partialorder %v3580_v38, 0.0  ;;  %v1540_v41 = vmul.f32 0.2, %v3580_v38  ;;  %v1520_v42 = vpop.f32.mrb[17].mxu0  ;;  %v1545_v43 = vrot.slane %v1541_v39, 7  ;;  %v1557_v44 = vrot.slane %v1541_v39, 1  ;;  %3585 = vmatprep.mubr.msk.f32.mxu1 %vm1574_vm1, %v1541_v39 }
 0x2f3   :  { %vm1535_vm4 = vcmp.ge.f32.partialorder %v1520_v42, 0.0  ;;  %v1539_v45 = vmul.f32 0.2, %v1520_v42  ;;  %3586 = vmatmul.mubr.msk.f32.vlgmr.msra.gmra.mrb[8].mxu1 %vm1574_vm1, %v1542_v34  ;;  %vm2220_vm10 = vcmask 261120  }
 0x2f4   :  { %3772 = vmatpush3.bf16.msra.mxu1 %v3769_v26  ;;  %v1544_v46 = vsel %vm1536_vm3, %v3580_v38, %v1540_v41  ;;  %v1551_v48 = vsel %vm164_vm2, %v1545_v43, %v1546_v35  ;;  %v1563_v49 = vsel %vm197_vm5, %v1557_v44, %v1558_v36  ;;  %v1911_v38 = vand.u32 7, %v4264_v63  ;;  %v2502_v63 = vld [vmem:[%s4675_s7] sm:$0xff] }
 0x2f5   :  { %v1543_v50 = vsel %vm1535_vm4, %v1520_v42, %v1539_v45  ;;  %v1548_v51 = vrot.slane %v1544_v46, 7  ;;  %v1560_v52 = vrot.slane %v1544_v46, 1  ;;  %3774 = vmatprep.subr.bf16.mxu1 %v3773_v40 }
 0x2f6   :  { %v1547_v53 = vrot.slane %v1543_v50, 7  ;;  %v1559_v54 = vrot.slane %v1543_v50, 1  ;;  %3588 = vmatprep.mubr.msk.f32.mxu1 %vm1574_vm1, %v1543_v50 }
 0x2f7   :  { %3589 = vmatmul.mubr.msk.f32.gmra.mrb[10].mxu1 %vm1574_vm1, %v1544_v46  ;;  %v1552_v55 = vsel %vm164_vm2, %v1548_v51, %v1545_v43  ;;  %v1564_v56 = vsel %vm197_vm5, %v1560_v52, %v1557_v44 }
 0x2f8   :  { %v1553_v58 = vsel %vm4267_vm12, %v1552_v55, 0.0  ;;  %v1550_v59 = vsel %vm164_vm2, %v1546_v35, %v1547_v53  ;;  %v1549_v60 = vsel %vm164_vm2, %v1547_v53, %v1548_v51  ;;  %v1562_v62 = vsel %vm197_vm5, %v1558_v36, %v1559_v54  ;;  %v3264_v53 = vld [vmem:[%s4674_s6 + $0x38] sm:$0xff]  ;;  %v2211_v55 = vld [vmem:[%s4674_s6] sm:$0xff] }
 0x2f9   :  { %3595 = vmatprep.mubr.msk.f32.mxu1 %vm1574_vm1, %v1553_v58  ;;  %v1561_v16 = vsel %vm197_vm5, %v1559_v54, %v1560_v52  ;;  %v1555_v61 = vsel %vm4273_vm13, %v1550_v59, 0.0  ;;  %v1566_v27 = vsel %vm4291_vm14, %v1562_v62, 0.0  ;;  %v1568_v57 = vsel %vm4307_vm15, %v1564_v56, 0.0  ;;  %v3263_v52 = vld [vmem:[%s4674_s6 + $0x30] sm:$0xff]  ;;  %v2212_v56 = vld [vmem:[%s4674_s6 + $0x8] sm:$0xff] }
 0x2fa   :  { %vm4406_vm12 = vcmp.ne.s32.totalorder %v1911_v38, 0  ;;  %vm4412_vm13 = vcmp.ne.s32.totalorder %v1904_v31, 7  ;;  %vm4424_vm14 = vcmp.ne.s32.totalorder %v1911_v38, 7  ;;  %v3793_v54 = vpack.c.bf16 %v3264_v53, %v3263_v52  ;;  %v3288_v31 = vld [vmem:[%s4676_s8 + $0x50] sm:$0xff]  ;;  %v2505_v53 = vld [vmem:[%s4675_s7 + $0x18] sm:$0xff] }
 0x2fb   :  { %3596 = vmatmul.mubr.msk.f32.vlgmr.msra.gmra.mrb[8].mxu1 %vm1574_vm1, %v1551_v48  ;;  %v3797_v58 = vpack.c.bf16 %v2212_v56, %v2211_v55  ;;  %v2504_v52 = vld [vmem:[%s4675_s7 + $0x10] sm:$0xff]  ;;  %v3281_v56 = vld [vmem:[%s4675_s7 + $0x40] sm:$0xff] }
 0x2fc   :  { %3598 = vmatprep.mubr.msk.f32.mxu1 %vm1574_vm1, %v1555_v61  ;;  %3776 = vmatpush3.bf16.msra.mxu1 %v3773_v40  ;;  %v2214_v61 = vld [vmem:[%s4674_s6 + $0x18] sm:$0xff]  ;;  %v3823_v55 = vpack.c.bf16 %v2505_v53, %v2504_v52  ;;  %v3305_v53 = vld [vmem:[%s4677_s9 + $0x1] sm:$0x1] }
 0x2fd   :  { %3790 = vmatprep.subr.bf16.mxu1 %v3789_v8 }
 0x2ff   :  { %3599 = vmatmul.mubr.msk.f32.gmra.mrb[10].mxu1 %vm1574_vm1, %v1549_v60 }
 0x300   :  { %3605 = vmatprep.mubr.msk.f32.mxu1 %vm1574_vm1, %v1563_v49 }
 0x303   :  { %3606 = vmatmul.mubr.msk.f32.vlgmr.msra.gmra.mrb[8].mxu1 %vm1574_vm1, %v1566_v27 }
 0x304   :  { %3608 = vmatprep.mubr.msk.f32.mxu1 %vm1574_vm1, %v1561_v16  ;;  %3792 = vmatpush3.bf16.msra.mxu1 %v3789_v8  ;;  %v2213_v16 = vld [vmem:[%s4674_s6 + $0x10] sm:$0xff] }
 0x305   :  { %3794 = vmatprep.subr.bf16.mxu1 %v3793_v54  ;;  %v3801_v2 = vpack.c.bf16 %v2214_v61, %v2213_v16  ;;  %v3284_v16 = vld [vmem:[%s4675_s7 + $0x58] sm:$0xff] }
 0x307   :  { %3609 = vmatmul.mubr.msk.f32.gmra.mrb[10].mxu1 %vm1574_vm1, %v1568_v57 }
 0x308   :  { %3796 = vmatpush3.bf16.msra.mxu1 %v3793_v54  ;;  %v2488_v54 = vand.u32 3, %v4021_v6 }
 0x309   :  { %3798 = vmatprep.subr.bf16.mxu1 %v3797_v58 }
 0x30a   :  { %vm4551_vm3 = vcmp.ne.s32.totalorder %v2488_v54, 0  ;;  %vm4568_vm4 = vcmp.ne.s32.totalorder %v2488_v54, 3  ;;  %v3004_v54 = vld [vmem:[%s4677_s9] sm:$0x1] }
 0x3d6   :  { %v3607_v9 = vpop.f32.mrb[8].mxu1 }
 0x3d7   :  { %vm1874_vm6 = vcmp.ge.f32.partialorder %v3607_v9, 0.0  ;;  %v1878_v10 = vmul.f32 0.2, %v3607_v9  ;;  %v1850_v11 = vpop.f32.mrb[9].mxu1 }
 0x3d8   :  { %vm1873_vm7 = vcmp.ge.f32.partialorder %v1850_v11, 0.0  ;;  %v1877_v12 = vmul.f32 0.2, %v1850_v11 }
 0x3d9   :  { %v1882_v13 = vsel %vm1874_vm6, %v3607_v9, %v1878_v10 }
 0x3da   :  { %1886 = vst.msk [vmem:[#allocation3 + $0x8] sm:$0xff] %vm1574_vm1, %v1882_v13  ;;  %v1881_v14 = vsel %vm1873_vm7, %v1850_v11, %v1877_v12  ;;  %v3610_v15 = vpop.f32.mrb[10].mxu1  ;;  %v3805_v13 = vpack.c.bf16 %v3270_v7, %v3269_v5  ;;  %v2744_v5 = vld [vmem:[%s4676_s8 + $0x8] sm:$0xff]  ;;  %vm2760_vm7 = vcmask 523264  }
 0x3db   :  { %1885 = vst.msk [vmem:[#allocation3] sm:$0xff] %vm1574_vm1, %v1881_v14  ;;  %vm1876_vm8 = vcmp.ge.f32.partialorder %v3610_v15, 0.0  ;;  %v1880_v17 = vmul.f32 0.2, %v3610_v15  ;;  %v1860_v18 = vpop.f32.mrb[11].mxu1  ;;  %v3271_v14 = vld [vmem:[%s4674_s6 + $0x50] sm:$0xff] }
 0x3dc   :  { %vm1875_vm9 = vcmp.ge.f32.partialorder %v1860_v18, 0.0  ;;  %v1879_v19 = vmul.f32 0.2, %v1860_v18 }
 0x3dd   :  { %v1884_v20 = vsel %vm1876_vm8, %v3610_v15, %v1880_v17  ;;  %v3272_v15 = vld [vmem:[%s4674_s6 + $0x58] sm:$0xff] }
 0x3de   :  { %1888 = vst.msk [vmem:[#allocation3 + $0x18] sm:$0xff] %vm1574_vm1, %v1884_v20  ;;  %v1883_v21 = vsel %vm1875_vm9, %v1860_v18, %v1879_v19  ;;  %v3809_v17 = vpack.c.bf16 %v3272_v15, %v3271_v14  ;;  %v2747_v15 = vld [vmem:[%s4676_s8 + $0x20] sm:$0xff]  ;;  %vm2999_vm9 = vcmask 1047556  }
 0x3df   :  { %1887 = vst.msk [vmem:[#allocation3 + $0x10] sm:$0xff] %vm1574_vm1, %v1883_v21  ;;  %v3938_v21 = vmov 0.0|0.0  }
 0x3e2   :  { %v1889_v22 = vld [vmem:[#allocation3] ss:$2 sm:$0xff]  ;;  %v1893_v23 = vld [vmem:[#allocation3 + $0x1] ss:$2 sm:$0xff] }
 0x3e3   :  { %v1896_v37 = vadd.f32 %v1893_v23, %v1889_v22  ;;  %v3275_v22 = vld [vmem:[%s4675_s7 + $0x20] sm:$0xff]  ;;  %v3276_v23 = vld [vmem:[%s4675_s7 + $0x28] sm:$0xff] }
 0x3e4   :  { %v3814_v25 = vpack.c.bf16 %v3276_v23, %v3275_v22  ;;  %v3296_v23 = vld [vmem:[%s4676_s8 + $0x80] sm:$0xff] }
 0x3e5   :  { %v1898_v24 = vmul.f32 0.5, %v1896_v37  ;;  %v3277_v37 = vld [vmem:[%s4675_s7 + $0x30] sm:$0xff] }
 0x3e6   :  { %v1891_v26 = vld [vmem:[#allocation3 + $0x10] ss:$2 sm:$0xff]  ;;  %v1895_v28 = vld [vmem:[#allocation3 + $0x11] ss:$2 sm:$0xff] }
 0x3e7   :  { %3615 = vmatprep.mubr.msk.f32.mxu0 %vm1574_vm1, %v1898_v24  ;;  %v1897_v30 = vadd.f32 %v1895_v28, %v1891_v26  ;;  %v1926_v35 = vrot.slane %v1898_v24, 7  ;;  %v1934_v42 = vrot.slane %v1898_v24, 1  ;;  %v3940_v24 = vmov 0.0   ;;  %v3278_v26 = vld [vmem:[%s4675_s7 + $0x38] sm:$0xff] }
 0x3e8   :  { %v3817_v28 = vpack.c.bf16 %v3278_v26, %v3277_v37  ;;  %v3297_v37 = vld [vmem:[%s4676_s8 + $0x88] sm:$0xff] }
 0x3e9   :  { %v1899_v32 = vmul.f32 0.5, %v1897_v30  ;;  %v3287_v30 = vld [vmem:[%s4676_s8 + $0x48] sm:$0xff]  ;;  %v3856_v26 = vpack.c.bf16 %v3297_v37, %v3296_v23 }
 0x3eb   :  { %3616 = vmatmul.mubr.msk.f32.vlgmr.msra.gmra.mrb[18].mxu0 %vm1574_vm1, %v1899_v32  ;;  %v1927_v36 = vrot.slane %v1899_v32, 7  ;;  %v1935_v39 = vrot.slane %v1899_v32, 1  ;;  %v3832_v32 = vpack.c.bf16 %v3287_v30, %v3286_v29  ;;  %v3299_v29 = vld [vmem:[%s4676_s8 + $0x98] sm:$0xff] }
 0x3ec   :  { %3784 = vmatpush3.bf16.msra.mxu0 %v3781_v4 }
 0x3ed   :  { %v1929_v40 = vsel %vm164_vm2, %v1927_v36, %v1926_v35  ;;  %3786 = vmatprep.subr.bf16.mxu0 %v3785_v33  ;;  %v1928_v44 = vsel %vm164_vm2, %v1926_v35, %v1927_v36  ;;  %v1936_v45 = vsel %vm197_vm5, %v1934_v42, %v1935_v39  ;;  %v1937_v50 = vsel %vm197_vm5, %v1935_v39, %v1934_v42  ;;  %v3290_v35 = vld [vmem:[%s4676_s8 + $0x60] sm:$0xff]  ;;  %v3291_v36 = vld [vmem:[%s4676_s8 + $0x68] sm:$0xff] }
 0x3ee   :  { %v1930_v41 = vsel %vm4396_vm11, %v1929_v40, 0.0  ;;  %v1931_v46 = vsel %vm4406_vm12, %v1928_v44, 0.0  ;;  %v1938_v48 = vsel %vm4412_vm13, %v1936_v45, 0.0  ;;  %v1939_v51 = vsel %vm4424_vm14, %v1937_v50, 0.0  ;;  %v2503_v45 = vld [vmem:[%s4675_s7 + $0x8] sm:$0xff] }
 0x3ef   :  { %3622 = vmatprep.mubr.msk.f32.mxu0 %vm1574_vm1, %v1930_v41  ;;  %v3838_v38 = vpack.c.bf16 %v3291_v36, %v3290_v35  ;;  %v3820_v50 = vpack.c.bf16 %v2503_v45, %v2502_v63  ;;  %v3302_v35 = vld [vmem:[%s4676_s8 + $0xb0] sm:$0xff]  ;;  %v3303_v36 = vld [vmem:[%s4676_s8 + $0xb8] sm:$0xff] }
 0x3f3   :  { %3623 = vmatmul.mubr.msk.f32.vlgmr.msra.gmra.mrb[18].mxu0 %vm1574_vm1, %v1931_v46 }
 0x3f4   :  { %3788 = vmatpush3.bf16.msra.mxu0 %v3785_v33  ;;  %3629 = vmatprep.mubr.msk.f32.mxu0 %vm1574_vm1, %v1938_v48  ;;  %v3289_v33 = vld [vmem:[%s4676_s8 + $0x58] sm:$0xff] }
 0x3f5   :  { %3813 = vmatprep.subr.bf16.mxu0 %v3938_v21  ;;  %v3835_v34 = vpack.c.bf16 %v3289_v33, %v3288_v31  ;;  %v3301_v33 = vld [vmem:[%s4676_s8 + $0xa8] sm:$0xff] }
 0x3fb   :  { %3630 = vmatmul.mubr.msk.f32.vlgmr.msra.gmra.mrb[18].mxu0 %vm1574_vm1, %v1939_v51 }
 0x3fc   :  { %3815 = vmatpush3.bf16.msra.mxu0 %v3814_v25 }
 0x3fd   :  { %3816 = vmatprep.subr.bf16.mxu0 %v3938_v21 }
 0x400   :  { %3818 = vmatpush3.bf16.msra.mxu0 %v3817_v28  ;;  %v3298_v28 = vld [vmem:[%s4676_s8 + $0x90] sm:$0xff] }
 0x401   :  { %3819 = vmatprep.subr.bf16.mxu0 %v3938_v21  ;;  %v3859_v31 = vpack.c.bf16 %v3299_v29, %v3298_v28 }
 0x4ce   :  { %v3631_v59 = vpop.f32.mrb[18].mxu0 }
 0x4cf   :  { %vm2194_vm15 = vcmp.ge.f32.partialorder %v3631_v59, 0.0  ;;  %v2196_v60 = vmul.f32 0.2, %v3631_v59  ;;  %v2182_v62 = vpop.f32.mrb[19].mxu0 }
 0x4d0   :  { %vm2193_vm0 = vcmp.ge.f32.partialorder %v2182_v62, 0.0  ;;  %v2195_v27 = vmul.f32 0.2, %v2182_v62 }
 0x4d1   :  { %v2198_v57 = vsel %vm2194_vm15, %v3631_v59, %v2196_v60 }
 0x4d2   :  { %v2200_v47 = vrot.slane %v2198_v57, 7  ;;  %v2206_v0 = vrot.slane %v2198_v57, 1  ;;  %v2197_v1 = vsel %vm2193_vm0, %v2182_v62, %v2195_v27  ;;  %v3283_v62 = vld [vmem:[%s4675_s7 + $0x50] sm:$0xff] }
 0x4d3   :  { %v2199_v3 = vrot.slane %v2197_v1, 7  ;;  %v2205_v4 = vrot.slane %v2197_v1, 1  ;;  %3640 = vmatprep.mubr.msk.f32.mxu1 %vm2220_vm10, %v2197_v1  ;;  %v3829_v27 = vpack.c.bf16 %v3284_v16, %v3283_v62  ;;  %v3292_v1 = vld [vmem:[%s4676_s8 + $0x70] sm:$0xff] }
 0x4d4   :  { %3641 = vmatmul.mubr.msk.f32.vlgmr.msra.gmra.mrb[12].mxu1 %vm2220_vm10, %v2198_v57 }
 0x4d5   :  { %3800 = vmatpush3.bf16.msra.mxu1 %v3797_v58  ;;  %v2202_v8 = vsel %vm164_vm2, %v2200_v47, %v2199_v3  ;;  %v2201_v9 = vsel %vm164_vm2, %v2199_v3, %v2200_v47  ;;  %v2207_v10 = vsel %vm197_vm5, %v2205_v4, %v2206_v0  ;;  %v2208_v11 = vsel %vm197_vm5, %v2206_v0, %v2205_v4  ;;  %v3282_v58 = vld [vmem:[%s4675_s7 + $0x48] sm:$0xff]  ;;  %v2743_v4 = vld [vmem:[%s4676_s8] sm:$0xff] }
 0x4d6   :  { %v2203_v12 = vsel %vm4396_vm11, %v2202_v8, 0.0  ;;  %3802 = vmatprep.subr.bf16.mxu1 %v3801_v2  ;;  %v2204_v18 = vsel %vm4406_vm12, %v2201_v9, 0.0  ;;  %v2209_v19 = vsel %vm4412_vm13, %v2207_v10, 0.0  ;;  %v2210_v20 = vsel %vm4424_vm14, %v2208_v11, 0.0  ;;  %v2745_v11 = vld [vmem:[%s4676_s8 + $0x10] sm:$0xff] }
 0x4d7   :  { %3651 = vmatprep.mubr.msk.f32.mxu1 %vm2220_vm10, %v2203_v12  ;;  %vm3939_vm2 = vmmov 0   ;;  %v3826_v6 = vpack.c.bf16 %v3282_v58, %v3281_v56  ;;  %v3844_v10 = vpack.c.bf16 %v2744_v5, %v2743_v4  ;;  %v2746_v12 = vld [vmem:[%s4676_s8 + $0x18] sm:$0xff]  ;;  %vm3160_vm11 = vcmask 24576  }
 0x4d8   :  { %3673 = vmatprep.mubr.msk.f32.mxu0 %vm3939_vm2, %v3940_v24  ;;  %v3847_v14 = vpack.c.bf16 %v2746_v12, %v2745_v11 }
 0x4d9   :  { %3804 = vmatpush3.bf16.msra.mxu1 %v3801_v2  ;;  %v3293_v2 = vld [vmem:[%s4676_s8 + $0x78] sm:$0xff] }
 0x4da   :  { %3806 = vmatprep.subr.bf16.mxu1 %v3805_v13  ;;  %v3841_v3 = vpack.c.bf16 %v3293_v2, %v3292_v1 }
 0x4dc   :  { %3652 = vmatmul.mubr.msk.f32.vlgmr.msra.gmra.mrb[12].mxu1 %vm2220_vm10, %v2204_v18 }
 0x4dd   :  { %3808 = vmatpush3.bf16.msra.mxu1 %v3805_v13  ;;  %3662 = vmatprep.mubr.msk.f32.mxu1 %vm2220_vm10, %v2209_v19  ;;  %v2749_v19 = vld [vmem:[%s4676_s8 + $0x30] sm:$0xff] }
 0x4de   :  { %3810 = vmatprep.subr.bf16.mxu1 %v3809_v17 }
 0x4e1   :  { %3812 = vmatpush3.bf16.msra.mxu1 %v3809_v17  ;;  %v2748_v17 = vld [vmem:[%s4676_s8 + $0x28] sm:$0xff] }
 0x4e2   :  { %3831 = vmatprep.subr.bf16.mxu1 %v3938_v21  ;;  %v3850_v18 = vpack.c.bf16 %v2748_v17, %v2747_v15 }
 0x4e4   :  { %3663 = vmatmul.mubr.msk.f32.vlgmr.msra.gmra.mrb[12].mxu1 %vm2220_vm10, %v2210_v20  ;;  %v2750_v20 = vld [vmem:[%s4676_s8 + $0x38] sm:$0xff] }
 0x4e5   :  { %3714 = vmatprep.mubr.msk.f32.mxu1 %vm3939_vm2, %v3940_v24  ;;  %3833 = vmatpush3.bf16.msra.mxu1 %v3832_v32  ;;  %v3853_v22 = vpack.c.bf16 %v2750_v20, %v2749_v19  ;;  %v3300_v32 = vld [vmem:[%s4676_s8 + $0xa0] sm:$0xff] }
 0x4e6   :  { %3834 = vmatprep.subr.bf16.mxu1 %v3938_v21 }
 0x4e9   :  { %3836 = vmatpush3.bf16.msra.mxu1 %v3835_v34  ;;  %v3862_v34 = vpack.c.bf16 %v3301_v33, %v3300_v32 }
 0x4ea   :  { %3837 = vmatprep.subr.bf16.mxu1 %v3938_v21 }
 0x4ed   :  { %3839 = vmatpush3.bf16.msra.mxu1 %v3838_v38  ;;  %v3865_v38 = vpack.c.bf16 %v3303_v36, %v3302_v35 }
 0x4ee   :  { %3840 = vmatprep.subr.bf16.mxu1 %v3938_v21 }
 0x4f1   :  { %3842 = vmatpush3.bf16.msra.mxu1 %v3841_v3 }
 0x4f2   :  { %3843 = vmatprep.subr.bf16.mxu1 %v3938_v21 }
 0x5b7   :  { %v3664_v39 = vpop.f32.mrb[12].mxu1 }
 0x5b8   :  { %vm2472_vm5 = vcmp.ge.f32.partialorder %v3664_v39, 0.0  ;;  %v2474_v40 = vmul.f32 0.2, %v3664_v39  ;;  %v2460_v41 = vpop.f32.mrb[13].mxu1 }
 0x5b9   :  { %vm2471_vm1 = vcmp.ge.f32.partialorder %v2460_v41, 0.0  ;;  %v2473_v42 = vmul.f32 0.2, %v2460_v41 }
 0x5ba   :  { %v2476_v43 = vsel %vm2472_vm5, %v3664_v39, %v2474_v40 }
 0x5bb   :  { %2478 = vst.msk [vmem:[#allocation4 + $0x8] sm:$0xff] %vm2220_vm10, %v2476_v43  ;;  %v2475_v44 = vsel %vm2471_vm1, %v2460_v41, %v2473_v42 }
 0x5bc   :  { %2477 = vst.msk [vmem:[#allocation4] sm:$0xff] %vm2220_vm10, %v2475_v44 }
 0x5c3   :  { %v2479_v46 = vld [vmem:[#allocation4] ss:$2 sm:$0xff]  ;;  %v2481_v48 = vld [vmem:[#allocation4 + $0x1] ss:$2 sm:$0xff] }
 0x5c4   :  { %v2482_v49 = vadd.f32 %v2481_v48, %v2479_v46 }
 0x5c6   :  { %v2483_v51 = vmul.f32 0.5, %v2482_v49 }
 0x5c8   :  { %3674 = vmatmul.mubr.msk.f32.vlgmr.msra.gmra.mrb[20].mxu0 %vm2220_vm10, %v2483_v51  ;;  %v2497_v59 = vrot.slane %v2483_v51, 7  ;;  %v2500_v57 = vrot.slane %v2483_v51, 1 }
 0x5c9   :  { %3821 = vmatpush3.bf16.msra.mxu0 %v3820_v50  ;;  %3684 = vmatprep.mubr.msk.f32.mxu0 %vm3939_vm2, %v3940_v24 }
 0x5ca   :  { %3822 = vmatprep.subr.bf16.mxu0 %v3938_v21  ;;  %v2498_v61 = vsel %vm4551_vm3, %v2497_v59, 0.0  ;;  %v2501_v0 = vsel %vm4568_vm4, %v2500_v57, 0.0 }
 0x5cd   :  { %3824 = vmatpush3.bf16.msra.mxu0 %v3823_v55 }
 0x5ce   :  { %3825 = vmatprep.subr.bf16.mxu0 %v3938_v21 }
 0x5d0   :  { %3685 = vmatmul.mubr.msk.f32.vlgmr.msra.gmra.mrb[20].mxu0 %vm2220_vm10, %v2498_v61 }
 0x5d1   :  { %3827 = vmatpush3.bf16.msra.mxu0 %v3826_v6  ;;  %3695 = vmatprep.mubr.msk.f32.mxu0 %vm3939_vm2, %v3940_v24 }
 0x5d2   :  { %3828 = vmatprep.subr.bf16.mxu0 %v3938_v21 }
 0x5d5   :  { %3830 = vmatpush3.bf16.msra.mxu0 %v3829_v27 }
 0x5d6   :  { %3755 = vmatprep.subr.mxu0 %v3940_v24 }
 0x5d8   :  { %3696 = vmatmul.mubr.msk.f32.vlgmr.msra.gmra.mrb[20].mxu0 %vm2220_vm10, %v2501_v0 }
 0x5d9   :  { %3757 = vmatprep.mubr.msk.f32.mxu0 %vm3939_vm2, %v3940_v24 }
 0x6ab   :  { %v2731_v7 = vpop.f32.mrb[20].mxu0 }
 0x6ac   :  { %vm2736_vm6 = vcmp.ge.f32.partialorder %v2731_v7, 0.0  ;;  %v2737_v8 = vmul.f32 0.2, %v2731_v7  ;;  %v3697_v9 = vpop.f32.mrb[21].mxu0 }
 0x6ae   :  { %v2738_v13 = vsel %vm2736_vm6, %v2731_v7, %v2737_v8 }
 0x6af   :  { %3715 = vmatmul.mubr.msk.f32.vlgmr.msra.gmra.mrb[14].mxu1 %vm2760_vm7, %v2738_v13  ;;  %v2739_v25 = vrot.slane %v2738_v13, 7  ;;  %v2741_v39 = vrot.slane %v2738_v13, 1 }
 0x6b0   :  { %3845 = vmatpush3.bf16.msra.mxu1 %v3844_v10  ;;  %3733 = vmatprep.mubr.msk.f32.mxu1 %vm3939_vm2, %v3940_v24 }
 0x6b1   :  { %3846 = vmatprep.subr.bf16.mxu1 %v3938_v21  ;;  %v2740_v30 = vsel %vm4551_vm3, %v2739_v25, 0.0  ;;  %v2742_v40 = vsel %vm4568_vm4, %v2741_v39, 0.0 }
 0x6b4   :  { %3848 = vmatpush3.bf16.msra.mxu1 %v3847_v14 }
 0x6b5   :  { %3849 = vmatprep.subr.bf16.mxu1 %v3938_v21 }
 0x6b8   :  { %3851 = vmatpush3.bf16.msra.mxu1 %v3850_v18 }
 0x6b9   :  { %3852 = vmatprep.subr.bf16.mxu1 %v3938_v21 }
 0x6bc   :  { %3854 = vmatpush3.bf16.msra.mxu1 %v3853_v22 }
 0x6bd   :  { %3855 = vmatprep.subr.bf16.mxu1 %v3938_v21 }
 0x6bf   :  { %3734 = vmatmul.mubr.msk.f32.vlgmr.msra.gmra.mrb[14].mxu1 %vm2760_vm7, %v2740_v30 }
 0x6c0   :  { %3857 = vmatpush3.bf16.msra.mxu1 %v3856_v26  ;;  %3752 = vmatprep.mubr.msk.f32.mxu1 %vm3939_vm2, %v3940_v24 }
 0x6c1   :  { %3858 = vmatprep.subr.bf16.mxu1 %v3938_v21 }
 0x6c4   :  { %3860 = vmatpush3.bf16.msra.mxu1 %v3859_v31 }
 0x6c5   :  { %3861 = vmatprep.subr.bf16.mxu1 %v3938_v21 }
 0x6c8   :  { %3863 = vmatpush3.bf16.msra.mxu1 %v3862_v34 }
 0x6c9   :  { %3864 = vmatprep.subr.bf16.mxu1 %v3938_v21 }
 0x6cc   :  { %3866 = vmatpush3.bf16.msra.mxu1 %v3865_v38 }
 0x6cf   :  { %3753 = vmatmul.mubr.msk.f32.vlgmr.msra.gmra.mrb[14].mxu1 %vm2760_vm7, %v2742_v40 }
 0x7a2   :  { %v2985_v41 = vpop.f32.mrb[14].mxu1 }
 0x7a3   :  { %vm2990_vm8 = vcmp.ge.f32.partialorder %v2985_v41, 0.0  ;;  %v2991_v42 = vmul.f32 0.2, %v2985_v41  ;;  %v3754_v43 = vpop.f32.mrb[15].mxu1 }
 0x7a5   :  { %v2992_v44 = vsel %vm2990_vm8, %v2985_v41, %v2991_v42 }
 0x7a6   :  { %2993 = vst.msk [vmem:[#allocation5] sm:$0xff] %vm2760_vm7, %v2992_v44 }
 0x7ad   :  { %v2994_v63 = vld [vmem:[#allocation5] ss:$2 sm:$0xf]  ;;  %v2996_v45 = vld [vmem:[#allocation5 + $0x1] ss:$2 sm:$0xf] }
 0x7ae   :  { %v2997_v46 = vadd.f32 %v2996_v45, %v2994_v63 }
 0x7b0   :  { %v2998_v48 = vmul.f32 0.5, %v2997_v46 }
 0x7b2   :  { %v3000_v21 = vrot.slane %v2998_v48, 4 }
 0x7b4   :  { %v3001_v49 = vsel %vm2999_vm9, %v3000_v21, %v2998_v48 }
 0x7b5   :  { %v3002_v50 = vrot.slane %v3001_v49, 4 }
 0x7b7   :  { %v3003_v51 = vsel %vm2999_vm9, %v3002_v50, %v2998_v48 }
 0x7b8   :  { %v3008_v52 = vrot.slane %v3003_v51, 1 }
 0x7ba   :  { %3756 = vmatpush3.xpose.msk.msra.mxu0 %vm2760_vm7, %v3008_v52 }
 0x7bb   :  { %3760 = vmatprep.subr.mxu0 %v3940_v24 }
 0x7bd   :  { %3758 = vmatmul.mubr.msk.f32.vlgmr.msra.gmra.mrb[22].mxu0 %vm2760_vm7, %v3305_v53 }
 0x7be   :  { %3761 = vmatpush3.xpose.msk.msra.mxu0 %vm2760_vm7, %v2998_v48  ;;  %3762 = vmatprep.mubr.msk.f32.mxu0 %vm3939_vm2, %v3940_v24 }
 0x7c5   :  { %3763 = vmatmul.mubr.msk.f32.vlgmr.msra.gmra.mrb[22].mxu0 %vm2760_vm7, %v3004_v54 }
 0x898   :  { %v3156_v55 = vpop.f32.mrb[22].mxu0 }
 0x899   :  { %3161 = vst.msk [vmem:[%s4678_s10] sm:$0x1] %vm3160_vm11, %v3156_v55  ;;  %v3764_v56 = vpop.f32.mrb[23].mxu0 }

</bundles_post_ra>
